<compile_context>
chip_gen: v7x
topology: tpu7x:2x2x1
jax: 0.10.0
libtpu: 0.0.40
codegen_flags: <defaults>
</compile_context>

<pallas_src>
import functools

import jax
import jax.numpy as jnp
from jax import lax
from jax.experimental import pallas as pl
from jax.experimental.pallas import tpu as pltpu

# ResNet-152 configuration: bottleneck blocks / base planes / first-block stride.
BLOCKS = (3, 8, 36, 3)
PLANES = (64, 128, 256, 512)
STRIDES = (1, 2, 2, 2)
EXPANSION = 4

_VMEM_LIMIT = 32 * 1024 * 1024        # leave headroom on v7x (64 MiB physical / TC)
_COMPUTE_DTYPE = jnp.bfloat16         # activations + weights; f32 accumulation


def _pick_tile(dim, target=256):
    if dim <= target:
        return dim
    t = target
    while dim % t:
        t //= 2
    return t


# --------------------- fused matmul (+bias, +residual, +ReLU) kernels ---------------------

def _mm_relu_kernel(a_ref, w_ref, b_ref, o_ref):
    acc = jnp.dot(a_ref[...], w_ref[...], preferred_element_type=jnp.float32)
    o_ref[...] = jnp.maximum(acc + b_ref[...], 0.0).astype(o_ref.dtype)


def _mm_linear_kernel(a_ref, w_ref, b_ref, o_ref):
    acc = jnp.dot(a_ref[...], w_ref[...], preferred_element_type=jnp.float32)
    o_ref[...] = (acc + b_ref[...]).astype(o_ref.dtype)


def _mm_res_relu_kernel(a_ref, w_ref, b_ref, r_ref, o_ref):
    acc = jnp.dot(a_ref[...], w_ref[...], preferred_element_type=jnp.float32)
    acc = acc + b_ref[...] + r_ref[...].astype(jnp.float32)
    o_ref[...] = jnp.maximum(acc, 0.0).astype(o_ref.dtype)


def _matmul(a, w, b, *, relu, residual=None):
    """a: (M, K) bf16, w: (K, N) bf16, b: (1, N) f32 -> (M, N) bf16."""
    M, K = a.shape
    N = w.shape[1]
    tm = _pick_tile(M, 256)
    tn = _pick_tile(N, 256)
    # keep >= 2 grid steps so both TensorCores (v7x) get work and DMA pipelines.
    if (M // tm) * (N // tn) < 2:
        if tn % 256 == 0:
            tn //= 2
        elif tm % 16 == 0:
            tm //= 2
    grid = (M // tm, N // tn)

    in_specs = [
        pl.BlockSpec((tm, K), lambda i, j: (i, 0)),
        pl.BlockSpec((K, tn), lambda i, j: (0, j)),
        pl.BlockSpec((1, tn), lambda i, j: (0, j)),
    ]
    args = [a, w, b]
    if residual is not None:
        in_specs.append(pl.BlockSpec((tm, tn), lambda i, j: (i, j)))
        args.append(residual)
        kernel = _mm_res_relu_kernel
    else:
        kernel = _mm_relu_kernel if relu else _mm_linear_kernel

    return pl.pallas_call(
        kernel,
        out_shape=jax.ShapeDtypeStruct((M, N), _COMPUTE_DTYPE),
        grid_spec=pltpu.PrefetchScalarGridSpec(
            num_scalar_prefetch=0,
            grid=grid,
            in_specs=in_specs,
            out_specs=pl.BlockSpec((tm, tn), lambda i, j: (i, j)),
        ),
        compiler_params=pltpu.CompilerParams(
            dimension_semantics=("parallel", "parallel"),
            vmem_limit_bytes=_VMEM_LIMIT),
    )(*args)


# --------------------- conv wrappers ---------------------

def conv1x1(x, w, b, *, relu, stride=1, residual=None):
    """1x1 conv (+folded BN) as a fused matmul. x: (N,H,W,Cin) -> (N,Ho,Wo,Cout)."""
    if stride != 1:
        x = x[:, ::stride, ::stride, :]
    N, H, W, C = x.shape
    Cout = w.shape[-1]
    a = x.reshape(N * H * W, C)
    r = None if residual is None else residual.reshape(N * H * W, Cout)
    out = _matmul(a, w, b, relu=relu, residual=r)
    return out.reshape(N, H, W, Cout)


def _conv3x3_kernel(x_ref, w_ref, b_ref, o_ref, *, Wp):
    # x_ref: (1, (H+2)*(W+2)+8, Cin) padded image flattened row-major (+8 slack rows)
    # w_ref: (9, Cin, tn)   taps in (kh, kw) order
    # b_ref: (1, tn) f32
    # o_ref: (1, H*(W+2), tn)  -- rows keep the padded width; the 2 garbage columns
    #                             per image row are sliced off by the caller.
    Lout = o_ref.shape[1]
    acc = jnp.zeros((Lout, o_ref.shape[2]), jnp.float32)
    for kh in range(3):
        for kw in range(3):
            a = x_ref[0, pl.ds(kh * Wp + kw, Lout), :]
            acc = acc + jnp.dot(a, w_ref[kh * 3 + kw],
                                preferred_element_type=jnp.float32)
    acc = acc + b_ref[...]
    o_ref[0] = jnp.maximum(acc, 0.0).astype(o_ref.dtype)


def conv3x3_s1_relu(x, w, b):
    """3x3 / stride 1 / pad 1 conv (+folded BN) + ReLU, in-kernel 9-tap accumulation.

    x: (N,H,W,C) bf16; w: (9,C,Cout) bf16; b: (1,Cout) f32."""
    N, H, W, C = x.shape
    Cout = w.shape[-1]
    Hp, Wp = H + 2, W + 2
    Lout = H * Wp
    Lin = Hp * Wp + 8                      # slack so every tap's window stays in-bounds
    xp = jnp.pad(x, ((0, 0), (1, 1), (1, 1), (0, 0)))
    xf = jnp.pad(xp.reshape(N, Hp * Wp, C), ((0, 0), (0, 8), (0, 0)))

    tn = _pick_tile(Cout, 256)
    grid = (Cout // tn, N)                 # Cout tiles outer so weights stream once

    out = pl.pallas_call(
        functools.partial(_conv3x3_kernel, Wp=Wp),
        out_shape=jax.ShapeDtypeStruct((N, Lout, Cout), _COMPUTE_DTYPE),
        grid_spec=pltpu.PrefetchScalarGridSpec(
            num_scalar_prefetch=0,
            grid=grid,
            in_specs=[
                pl.BlockSpec((1, Lin, C), lambda j, n: (n, 0, 0)),
                pl.BlockSpec((9, C, tn), lambda j, n: (0, 0, j)),
                pl.BlockSpec((1, tn), lambda j, n: (0, j)),
            ],
            out_specs=pl.BlockSpec((1, Lout, tn), lambda j, n: (n, 0, j)),
        ),
        compiler_params=pltpu.CompilerParams(
            dimension_semantics=("parallel", "parallel"),
            vmem_limit_bytes=_VMEM_LIMIT),
    )(xf, w, b)
    # drop the 2 padded (garbage) columns of each image row
    return out.reshape(N, H, Wp, Cout)[:, :, :W, :]


def conv3x3_s2_relu(x, w, b):
    """3x3 / stride 2 / pad 1 conv + ReLU (only the 3 stage-transition convs).

    Small im2col glue is fine here: the activations at these points are tiny."""
    N, H, W, C = x.shape
    Cout = w.shape[-1]
    Ho, Wo = H // 2, W // 2
    xp = jnp.pad(x, ((0, 0), (1, 1), (1, 1), (0, 0)))
    cols = jnp.concatenate(
        [xp[:, i:i + 2 * Ho - 1:2, j:j + 2 * Wo - 1:2, :]
         for i in range(3) for j in range(3)], axis=-1)          # (N,Ho,Wo,9C)
    a = cols.reshape(N * Ho * Wo, 9 * C)
    out = _matmul(a, w.reshape(9 * C, Cout), b, relu=True)
    return out.reshape(N, Ho, Wo, Cout)


def conv7x7_s2_relu(x, w, b):
    """Stem: 7x7 / stride 2 / pad 3 conv (+folded BN) + ReLU. x: (N,H,W,3)."""
    N, H, W, C = x.shape
    Ho, Wo = H // 2, W // 2
    xp = jnp.pad(x, ((0, 0), (3, 3), (3, 3), (0, 0)))
    cols = jnp.concatenate(
        [xp[:, i:i + 2 * Ho - 1:2, j:j + 2 * Wo - 1:2, :]
         for i in range(7) for j in range(7)], axis=-1)          # (N,Ho,Wo,147)
    a = cols.reshape(N * Ho * Wo, 49 * C)
    out = _matmul(a, w, b, relu=True)
    return out.reshape(N, Ho, Wo, w.shape[-1])


# --------------------- maxpool 3x3 / stride 2 / pad 1 ---------------------

def _maxpool_kernel(x_ref, o_ref):
    # x_ref: (1, 9, Ho, Wo, C) -- 9 window taps; o_ref: (1, Ho, Wo, C)
    m = x_ref[0, 0]
    for t in range(1, 9):
        m = jnp.maximum(m, x_ref[0, t])
    o_ref[0] = m


def maxpool3x3_s2(x):
    """x: (N,H,W,C) post-ReLU (so zero padding is equivalent to -inf padding)."""
    N, H, W, C = x.shape
    Ho, Wo = H // 2, W // 2
    xp = jnp.pad(x, ((0, 0), (1, 1), (1, 1), (0, 0)))
    taps = jnp.stack(
        [xp[:, i:i + 2 * Ho - 1:2, j:j + 2 * Wo - 1:2, :]
         for i in range(3) for j in range(3)], axis=1)           # (N,9,Ho,Wo,C)
    return pl.pallas_call(
        _maxpool_kernel,
        out_shape=jax.ShapeDtypeStruct((N, Ho, Wo, C), _COMPUTE_DTYPE),
        grid_spec=pltpu.PrefetchScalarGridSpec(
            num_scalar_prefetch=0,
            grid=(N,),
            in_specs=[pl.BlockSpec((1, 9, Ho, Wo, C),
                                   lambda n: (n, 0, 0, 0, 0))],
            out_specs=pl.BlockSpec((1, Ho, Wo, C), lambda n: (n, 0, 0, 0)),
        ),
        compiler_params=pltpu.CompilerParams(
            dimension_semantics=("parallel",),
            vmem_limit_bytes=_VMEM_LIMIT),
    )(taps)


# --------------------- parameters (synthetic, BN folded, pre-reshaped) ---------------------

def _conv_bn(key, w_shape, fan_in, lead=0):
    """He-init conv weight (stored with Cout last) with eval-mode BN folded in.

    Returns (w bf16, b f32) where b has shape lead_shape + (1, cout)."""
    cout = w_shape[-1]
    lead_shape = w_shape[:lead]
    ks = jax.random.split(key, 5)
    w = jax.random.normal(ks[0], w_shape, jnp.float32) * (2.0 / fan_in) ** 0.5
    pshape = lead_shape + (cout,)
    gamma = 1.0 + 0.1 * jax.random.normal(ks[1], pshape, jnp.float32)
    beta = 0.1 * jax.random.normal(ks[2], pshape, jnp.float32)
    mean = 0.1 * jax.random.normal(ks[3], pshape, jnp.float32)
    var = jax.random.uniform(ks[4], pshape, jnp.float32, 0.5, 1.5)
    scale = gamma / jnp.sqrt(var + 1e-5)
    bcast = lead_shape + (1,) * (len(w_shape) - lead - 1) + (cout,)
    w = (w * scale.reshape(bcast)).astype(_COMPUTE_DTYPE)
    b = (beta - mean * scale).reshape(lead_shape + (1, cout)).astype(jnp.float32)
    return w, b


def init_resnet152_params(key):
    keys = jax.random.split(key, 1 + len(BLOCKS))
    params = {}
    sw, sb = _conv_bn(keys[0], (49 * 3, 64), fan_in=49 * 3)      # 7x7 stem, im2col layout
    params['stem'] = {'w': sw, 'b': sb}

    inplanes = 64
    for li, (nb, planes, _) in enumerate(zip(BLOCKS, PLANES, STRIDES)):
        c4 = planes * EXPANSION
        k_first, k_rest = jax.random.split(keys[1 + li])
        kf = jax.random.split(k_first, 4)
        first = {}
        first['w1'], first['b1'] = _conv_bn(kf[0], (inplanes, planes), fan_in=inplanes)
        first['w2'], first['b2'] = _conv_bn(kf[1], (9, planes, planes), fan_in=9 * planes)
        first['w3'], first['b3'] = _conv_bn(kf[2], (planes, c4), fan_in=planes)
        first['wd'], first['bd'] = _conv_bn(kf[3], (inplanes, c4), fan_in=inplanes)

        kr = jax.random.split(k_rest, 3)
        nrest = nb - 1
        rest = {}
        rest['w1'], rest['b1'] = _conv_bn(kr[0], (nrest, c4, planes), fan_in=c4, lead=1)
        rest['w2'], rest['b2'] = _conv_bn(kr[1], (nrest, 9, planes, planes),
                                          fan_in=9 * planes, lead=1)
        rest['w3'], rest['b3'] = _conv_bn(kr[2], (nrest, planes, c4), fan_in=planes, lead=1)

        params[f'layer{li + 1}'] = {'first': first, 'rest': rest}
        inplanes = c4
    return params


# --------------------- ResNet-152 forward ---------------------

def bottleneck_first(x, p, stride):
    identity = conv1x1(x, p['wd'], p['bd'], relu=False, stride=stride)
    out = conv1x1(x, p['w1'], p['b1'], relu=True)
    if stride == 1:
        out = conv3x3_s1_relu(out, p['w2'], p['b2'])
    else:
        out = conv3x3_s2_relu(out, p['w2'], p['b2'])
    return conv1x1(out, p['w3'], p['b3'], relu=True, residual=identity)


def bottleneck_rest(x, p):
    out = conv1x1(x, p['w1'], p['b1'], relu=True)
    out = conv3x3_s1_relu(out, p['w2'], p['b2'])
    return conv1x1(out, p['w3'], p['b3'], relu=True, residual=x)


@jax.jit
def resnet152_features(x_nchw, params):
    # PyTorch module consumes NCHW; run NHWC / bf16 inside.
    x = jnp.transpose(x_nchw, (0, 2, 3, 1)).astype(_COMPUTE_DTYPE)
    x = conv7x7_s2_relu(x, params['stem']['w'], params['stem']['b'])
    x = maxpool3x3_s2(x)

    feats = []
    for li, stride in enumerate(STRIDES):
        lp = params[f'layer{li + 1}']
        x = bottleneck_first(x, lp['first'], stride)
        if BLOCKS[li] > 1:
            def body(h, p):
                return bottleneck_rest(h, p), None
            x, _ = lax.scan(body, x, lp['rest'])
        feats.append(x)

    # back to NCHW, f32 to match the PyTorch reference dtype
    return [jnp.transpose(f, (0, 3, 1, 2)).astype(jnp.float32) for f in feats]


def encoding_rawres152(x_nchw, params):
    # forward(x): return [x1, x2, x3, x4]
    return resnet152_features(x_nchw, params)


# --------------------- demo / self-check ---------------------

if __name__ == "__main__":
    key = jax.random.PRNGKey(0)
    kx, kp, k1, k2, k3, k4 = jax.random.split(key, 6)

    # --- tiny numeric self-check: 3x3 stride-1 kernel vs XLA conv reference ---
    xc = jax.random.normal(k1, (2, 8, 8, 64), jnp.float32).astype(_COMPUTE_DTYPE)
    wc, bc = _conv_bn(k2, (9, 64, 64), fan_in=9 * 64)
    got = conv3x3_s1_relu(xc, wc, bc).astype(jnp.float32)
    ref = lax.conv_general_dilated(
        xc.astype(jnp.float32), wc.astype(jnp.float32).reshape(3, 3, 64, 64),
        window_strides=(1, 1), padding="SAME",
        dimension_numbers=("NHWC", "HWIO", "NHWC"))
    ref = jnp.maximum(ref + bc.reshape(1, 1, 1, 64), 0.0)
    assert jnp.allclose(got, ref, rtol=5e-2, atol=5e-2), "conv3x3 kernel mismatch"

    # --- tiny numeric self-check: fused matmul + bias + residual + ReLU ---
    av = jax.random.normal(k3, (128, 96), jnp.float32).astype(_COMPUTE_DTYPE)
    wv = jax.random.normal(k4, (96, 256), jnp.float32).astype(_COMPUTE_DTYPE) * 0.1
    bv = 0.1 * jax.random.normal(k1, (1, 256), jnp.float32)
    rv = jax.random.normal(k2, (128, 256), jnp.float32).astype(_COMPUTE_DTYPE)
    gotm = _matmul(av, wv, bv, relu=True, residual=rv).astype(jnp.float32)
    refm = jnp.maximum(av.astype(jnp.float32) @ wv.astype(jnp.float32)
                       + bv + rv.astype(jnp.float32), 0.0)
    assert jnp.allclose(gotm, refm, rtol=5e-2, atol=5e-2), "matmul kernel mismatch"

    # --- full ResNet-152 backbone forward ---
    x = jax.random.normal(kx, (2, 3, 64, 64), jnp.float32)
    params = init_resnet152_params(kp)

    feats = encoding_rawres152(x, params)
    feats = jax.block_until_ready(feats)

    assert isinstance(feats, list) and len(feats) == 4
    expected = [(2, 256, 16, 16), (2, 512, 8, 8), (2, 1024, 4, 4), (2, 2048, 2, 2)]
    for f, s in zip(feats, expected):
        assert f.shape == s, (f.shape, s)
        assert f.dtype == jnp.float32
        assert bool(jnp.all(jnp.isfinite(f))), "non-finite features"

    print("KERNEL_OK")
</pallas_src>

<mosaic_0001>
module attributes {stable_mosaic.version = 11 : i64} {
  func.func @_conv3x3_kernel(%arg0: i32, %arg1: i32, %arg2: memref<1x108x64xbf16, #tpu.memory_space<vmem>>, %arg3: memref<9x64x64xbf16, #tpu.memory_space<vmem>>, %arg4: memref<1x64xf32, #tpu.memory_space<vmem>>, %arg5: memref<1x80x64xbf16, #tpu.memory_space<vmem>>) attributes {dimension_semantics = [#tpu.dimension_semantics<parallel>, #tpu.dimension_semantics<parallel>], iteration_bounds = array<i64: 1, 2>, scalar_prefetch = 0 : i64, scratch_operands = 0 : i64, tpu.core_type = #tpu.core_type<tc>, window_params = [{transform_indices = @transform_0, window_bounds = array<i64: 1, 108, 64>}, {transform_indices = @transform_1, window_bounds = array<i64: 9, 64, 64>}, {transform_indices = @transform_2, window_bounds = array<i64: 1, 64>}, {transform_indices = @transform_3, window_bounds = array<i64: 1, 80, 64>}]} {
    %cst = arith.constant 0.000000e+00 : f32
    %0 = vector.broadcast %cst : f32 to vector<80x64xf32>
    %c0 = arith.constant 0 : index
    %c0_0 = arith.constant 0 : index
    %c0_1 = arith.constant 0 : index
    %1 = vector.load %arg2[%c0, %c0_0, %c0_1] : memref<1x108x64xbf16, #tpu.memory_space<vmem>>, vector<1x80x64xbf16>
    %2 = vector.shape_cast %1 : vector<1x80x64xbf16> to vector<80x64xbf16>
    %c0_2 = arith.constant 0 : index
    %c0_3 = arith.constant 0 : index
    %c0_4 = arith.constant 0 : index
    %3 = vector.load %arg3[%c0_2, %c0_3, %c0_4] : memref<9x64x64xbf16, #tpu.memory_space<vmem>>, vector<1x64x64xbf16>
    %4 = vector.shape_cast %3 : vector<1x64x64xbf16> to vector<64x64xbf16>
    %cst_5 = arith.constant dense<0.000000e+00> : vector<80x64xf32>
    %5 = tpu.matmul %2, %4, %cst_5 {dimension_numbers = #tpu.dot_dimension_numbers<[1], [0], [0], [1], [0, 0, 1, 1], [], []>} : vector<80x64xbf16>, vector<64x64xbf16>, vector<80x64xf32> -> vector<80x64xf32>
    %6 = arith.addf %0, %5 : vector<80x64xf32>
    %c0_6 = arith.constant 0 : index
    %c1 = arith.constant 1 : index
    %c0_7 = arith.constant 0 : index
    %7 = vector.load %arg2[%c0_6, %c1, %c0_7] : memref<1x108x64xbf16, #tpu.memory_space<vmem>>, vector<1x80x64xbf16>
    %8 = vector.shape_cast %7 : vector<1x80x64xbf16> to vector<80x64xbf16>
    %c1_8 = arith.constant 1 : index
    %c0_9 = arith.constant 0 : index
    %c0_10 = arith.constant 0 : index
    %9 = vector.load %arg3[%c1_8, %c0_9, %c0_10] : memref<9x64x64xbf16, #tpu.memory_space<vmem>>, vector<1x64x64xbf16>
    %10 = vector.shape_cast %9 : vector<1x64x64xbf16> to vector<64x64xbf16>
    %cst_11 = arith.constant dense<0.000000e+00> : vector<80x64xf32>
    %11 = tpu.matmul %8, %10, %cst_11 {dimension_numbers = #tpu.dot_dimension_numbers<[1], [0], [0], [1], [0, 0, 1, 1], [], []>} : vector<80x64xbf16>, vector<64x64xbf16>, vector<80x64xf32> -> vector<80x64xf32>
    %12 = arith.addf %6, %11 : vector<80x64xf32>
    %c0_12 = arith.constant 0 : index
    %c2 = arith.constant 2 : index
    %c0_13 = arith.constant 0 : index
    %13 = vector.load %arg2[%c0_12, %c2, %c0_13] : memref<1x108x64xbf16, #tpu.memory_space<vmem>>, vector<1x80x64xbf16>
    %14 = vector.shape_cast %13 : vector<1x80x64xbf16> to vector<80x64xbf16>
    %c2_14 = arith.constant 2 : index
    %c0_15 = arith.constant 0 : index
    %c0_16 = arith.constant 0 : index
    %15 = vector.load %arg3[%c2_14, %c0_15, %c0_16] : memref<9x64x64xbf16, #tpu.memory_space<vmem>>, vector<1x64x64xbf16>
    %16 = vector.shape_cast %15 : vector<1x64x64xbf16> to vector<64x64xbf16>
    %cst_17 = arith.constant dense<0.000000e+00> : vector<80x64xf32>
    %17 = tpu.matmul %14, %16, %cst_17 {dimension_numbers = #tpu.dot_dimension_numbers<[1], [0], [0], [1], [0, 0, 1, 1], [], []>} : vector<80x64xbf16>, vector<64x64xbf16>, vector<80x64xf32> -> vector<80x64xf32>
    %18 = arith.addf %12, %17 : vector<80x64xf32>
    %c0_18 = arith.constant 0 : index
    %c10 = arith.constant 10 : index
    %c0_19 = arith.constant 0 : index
    %19 = vector.load %arg2[%c0_18, %c10, %c0_19] : memref<1x108x64xbf16, #tpu.memory_space<vmem>>, vector<1x80x64xbf16>
    %20 = vector.shape_cast %19 : vector<1x80x64xbf16> to vector<80x64xbf16>
    %c3 = arith.constant 3 : index
    %c0_20 = arith.constant 0 : index
    %c0_21 = arith.constant 0 : index
    %21 = vector.load %arg3[%c3, %c0_20, %c0_21] : memref<9x64x64xbf16, #tpu.memory_space<vmem>>, vector<1x64x64xbf16>
    %22 = vector.shape_cast %21 : vector<1x64x64xbf16> to vector<64x64xbf16>
    %cst_22 = arith.constant dense<0.000000e+00> : vector<80x64xf32>
    %23 = tpu.matmul %20, %22, %cst_22 {dimension_numbers = #tpu.dot_dimension_numbers<[1], [0], [0], [1], [0, 0, 1, 1], [], []>} : vector<80x64xbf16>, vector<64x64xbf16>, vector<80x64xf32> -> vector<80x64xf32>
    %24 = arith.addf %18, %23 : vector<80x64xf32>
    %c0_23 = arith.constant 0 : index
    %c11 = arith.constant 11 : index
    %c0_24 = arith.constant 0 : index
    %25 = vector.load %arg2[%c0_23, %c11, %c0_24] : memref<1x108x64xbf16, #tpu.memory_space<vmem>>, vector<1x80x64xbf16>
    %26 = vector.shape_cast %25 : vector<1x80x64xbf16> to vector<80x64xbf16>
    %c4 = arith.constant 4 : index
    %c0_25 = arith.constant 0 : index
    %c0_26 = arith.constant 0 : index
    %27 = vector.load %arg3[%c4, %c0_25, %c0_26] : memref<9x64x64xbf16, #tpu.memory_space<vmem>>, vector<1x64x64xbf16>
    %28 = vector.shape_cast %27 : vector<1x64x64xbf16> to vector<64x64xbf16>
    %cst_27 = arith.constant dense<0.000000e+00> : vector<80x64xf32>
    %29 = tpu.matmul %26, %28, %cst_27 {dimension_numbers = #tpu.dot_dimension_numbers<[1], [0], [0], [1], [0, 0, 1, 1], [], []>} : vector<80x64xbf16>, vector<64x64xbf16>, vector<80x64xf32> -> vector<80x64xf32>
    %30 = arith.addf %24, %29 : vector<80x64xf32>
    %c0_28 = arith.constant 0 : index
    %c12 = arith.constant 12 : index
    %c0_29 = arith.constant 0 : index
    %31 = vector.load %arg2[%c0_28, %c12, %c0_29] : memref<1x108x64xbf16, #tpu.memory_space<vmem>>, vector<1x80x64xbf16>
    %32 = vector.shape_cast %31 : vector<1x80x64xbf16> to vector<80x64xbf16>
    %c5 = arith.constant 5 : index
    %c0_30 = arith.constant 0 : index
    %c0_31 = arith.constant 0 : index
    %33 = vector.load %arg3[%c5, %c0_30, %c0_31] : memref<9x64x64xbf16, #tpu.memory_space<vmem>>, vector<1x64x64xbf16>
    %34 = vector.shape_cast %33 : vector<1x64x64xbf16> to vector<64x64xbf16>
    %cst_32 = arith.constant dense<0.000000e+00> : vector<80x64xf32>
    %35 = tpu.matmul %32, %34, %cst_32 {dimension_numbers = #tpu.dot_dimension_numbers<[1], [0], [0], [1], [0, 0, 1, 1], [], []>} : vector<80x64xbf16>, vector<64x64xbf16>, vector<80x64xf32> -> vector<80x64xf32>
    %36 = arith.addf %30, %35 : vector<80x64xf32>
    %c0_33 = arith.constant 0 : index
    %c20 = arith.constant 20 : index
    %c0_34 = arith.constant 0 : index
    %37 = vector.load %arg2[%c0_33, %c20, %c0_34] : memref<1x108x64xbf16, #tpu.memory_space<vmem>>, vector<1x80x64xbf16>
    %38 = vector.shape_cast %37 : vector<1x80x64xbf16> to vector<80x64xbf16>
    %c6 = arith.constant 6 : index
    %c0_35 = arith.constant 0 : index
    %c0_36 = arith.constant 0 : index
    %39 = vector.load %arg3[%c6, %c0_35, %c0_36] : memref<9x64x64xbf16, #tpu.memory_space<vmem>>, vector<1x64x64xbf16>
    %40 = vector.shape_cast %39 : vector<1x64x64xbf16> to vector<64x64xbf16>
    %cst_37 = arith.constant dense<0.000000e+00> : vector<80x64xf32>
    %41 = tpu.matmul %38, %40, %cst_37 {dimension_numbers = #tpu.dot_dimension_numbers<[1], [0], [0], [1], [0, 0, 1, 1], [], []>} : vector<80x64xbf16>, vector<64x64xbf16>, vector<80x64xf32> -> vector<80x64xf32>
    %42 = arith.addf %36, %41 : vector<80x64xf32>
    %c0_38 = arith.constant 0 : index
    %c21 = arith.constant 21 : index
    %c0_39 = arith.constant 0 : index
    %43 = vector.load %arg2[%c0_38, %c21, %c0_39] : memref<1x108x64xbf16, #tpu.memory_space<vmem>>, vector<1x80x64xbf16>
    %44 = vector.shape_cast %43 : vector<1x80x64xbf16> to vector<80x64xbf16>
    %c7 = arith.constant 7 : index
    %c0_40 = arith.constant 0 : index
    %c0_41 = arith.constant 0 : index
    %45 = vector.load %arg3[%c7, %c0_40, %c0_41] : memref<9x64x64xbf16, #tpu.memory_space<vmem>>, vector<1x64x64xbf16>
    %46 = vector.shape_cast %45 : vector<1x64x64xbf16> to vector<64x64xbf16>
    %cst_42 = arith.constant dense<0.000000e+00> : vector<80x64xf32>
    %47 = tpu.matmul %44, %46, %cst_42 {dimension_numbers = #tpu.dot_dimension_numbers<[1], [0], [0], [1], [0, 0, 1, 1], [], []>} : vector<80x64xbf16>, vector<64x64xbf16>, vector<80x64xf32> -> vector<80x64xf32>
    %48 = arith.addf %42, %47 : vector<80x64xf32>
    %c0_43 = arith.constant 0 : index
    %c22 = arith.constant 22 : index
    %c0_44 = arith.constant 0 : index
    %49 = vector.load %arg2[%c0_43, %c22, %c0_44] : memref<1x108x64xbf16, #tpu.memory_space<vmem>>, vector<1x80x64xbf16>
    %50 = vector.shape_cast %49 : vector<1x80x64xbf16> to vector<80x64xbf16>
    %c8 = arith.constant 8 : index
    %c0_45 = arith.constant 0 : index
    %c0_46 = arith.constant 0 : index
    %51 = vector.load %arg3[%c8, %c0_45, %c0_46] : memref<9x64x64xbf16, #tpu.memory_space<vmem>>, vector<1x64x64xbf16>
    %52 = vector.shape_cast %51 : vector<1x64x64xbf16> to vector<64x64xbf16>
    %cst_47 = arith.constant dense<0.000000e+00> : vector<80x64xf32>
    %53 = tpu.matmul %50, %52, %cst_47 {dimension_numbers = #tpu.dot_dimension_numbers<[1], [0], [0], [1], [0, 0, 1, 1], [], []>} : vector<80x64xbf16>, vector<64x64xbf16>, vector<80x64xf32> -> vector<80x64xf32>
    %54 = arith.addf %48, %53 : vector<80x64xf32>
    %c0_48 = arith.constant 0 : index
    %c0_49 = arith.constant 0 : index
    %55 = vector.load %arg4[%c0_48, %c0_49] : memref<1x64xf32, #tpu.memory_space<vmem>>, vector<1x64xf32>
    %56 = vector.broadcast %55 : vector<1x64xf32> to vector<80x64xf32>
    %57 = arith.addf %54, %56 : vector<80x64xf32>
    %cst_50 = arith.constant 0.000000e+00 : f32
    %58 = vector.broadcast %cst_50 : f32 to vector<80x64xf32>
    %59 = arith.maximumf %57, %58 : vector<80x64xf32>
    %60 = arith.truncf %59 : vector<80x64xf32> to vector<80x64xbf16>
    %c0_51 = arith.constant 0 : index
    %c0_52 = arith.constant 0 : index
    %c0_53 = arith.constant 0 : index
    %61 = vector.load %arg5[%c0_51, %c0_52, %c0_53] : memref<1x80x64xbf16, #tpu.memory_space<vmem>>, vector<1x80x64xbf16>
    %62 = vector.shape_cast %61 : vector<1x80x64xbf16> to vector<80x64xbf16>
    %63 = vector.shape_cast %60 : vector<80x64xbf16> to vector<1x80x64xbf16>
    tpu.vector_store %arg5[%c0_51, %c0_52, %c0_53], %63 {strides = array<i32>} : memref<1x80x64xbf16, #tpu.memory_space<vmem>>, vector<1x80x64xbf16>,
    return
  }
  func.func @transform_0(%arg0: i32, %arg1: i32) -> (i32, i32, i32) {
    %c0_i32 = arith.constant 0 : i32
    %c0_i32_0 = arith.constant 0 : i32
    %c0_i32_1 = arith.constant 0 : i32
    return %arg1, %c0_i32, %c0_i32_0 : i32, i32, i32
  }
  func.func @transform_1(%arg0: i32, %arg1: i32) -> (i32, i32, i32) {
    %c0_i32 = arith.constant 0 : i32
    %c0_i32_0 = arith.constant 0 : i32
    %c0_i32_1 = arith.constant 0 : i32
    return %c0_i32, %c0_i32_0, %arg0 : i32, i32, i32
  }
  func.func @transform_2(%arg0: i32, %arg1: i32) -> (i32, i32) {
    %c0_i32 = arith.constant 0 : i32
    %c0_i32_0 = arith.constant 0 : i32
    return %c0_i32, %arg0 : i32, i32
  }
  func.func @transform_3(%arg0: i32, %arg1: i32) -> (i32, i32, i32) {
    %c0_i32 = arith.constant 0 : i32
    %c0_i32_0 = arith.constant 0 : i32
    return %arg1, %c0_i32, %arg0 : i32, i32, i32
  }
}

</mosaic_0001>

<bundles_post_ra>
// kernel: tpu_custom_call.1
= control target key start
LH: loop header
LB: loop body
LE: loop exit
PB: predicated region body
PF: predicated region fallthrough
CT: control target
= control target key end

     0   :  { %8 = vsyncpa [#allocation3], 0  ;;  %s2571_s12 = smov 0   ;;  %s2573_s13 = smov 0   ;;  %s3068_s0 = inlined_call_operand.vmem [shape: bf16[2,108,64], index: 0, kind: input, shape index: {}]   ;;  %s3069_s1 = inlined_call_operand.hbm [shape: bf16[9,64,64], index: 1, kind: input, shape index: {}]   ;;  %s3070_s2 = inlined_call_operand.vmem [shape: f32[1,64], index: 2, kind: input, shape index: {}]   ;;  %s3071_s3 = inlined_call_operand.vmem [shape: bf16[2,80,64], index: 3, kind: output, shape index: {}]  }
   0x1   :  { %s2575_s14 = smov 0  }
   0x2 LB: > { %s1912_s15 = sadd.s32 4294967295, %s2544_s14   ;;  %s23_s16 = sadd.s32 1, %s2540_s13  ;;  %s2544_s14 = sphi %s2575_s14, %s14_s14   ;;  %s2540_s13 = sphi %s2573_s13, %s3081_s13   ;;  %s2536_s12 = sphi %s2571_s12, %s3080_s12  }
   0x3   : > { %p24_p0 = scmp.ge.s32.totalorder %s23_s16, 2  ;;  %p1914_p1 = scmp.ge.s32.totalorder %s2544_s14, 1 }
   0x4   : > { %p137_p2 = scmp.lt.s32.totalorder %s2544_s14, 3  ;;  %p2596_p4 = scmp.eq.s32.totalorder %s1912_s15, 0 }
   0x5   : > { %s3083_s16 = smov (%p24_p0, %s23_s16), 0  ;;  %s2546_s19 = smov [#allocation2]  }
   0x6   : > { %p2592_p3 = pnand %p1914_p1, %p137_p2  ;;  %s151_s20 = sshll.u32 %s2546_s19, 4  ;;  %s152_s20 = int_to_ptr.vmem [resolvable:$true] %s151_s20 }
   0x7   : > { %s3076_s18 = scalar_select %p2596_p4, 1, 0 }
   0x8   : > { %s3075_s17 = scalar_select %p2592_p3, 1, 0 }
   0x9   : > { %p2396_p5 = pneg %p2592_p3  ;;  %s2490_s24 = scalar_lea.hbm %s3069_s1, 4608 }
   0xa   : > { %p2491_p7 = scmp.ne.s32.totalorder %s3069_s1, %s2490_s24  ;;  %p2497_p11 = scmp.lt.u32.totalorder %s2490_s24, %s3069_s1 }
   0xb   : > { %p2604_p6 = pnand %p2596_p4, %p2396_p5 }
   0xd   : > { %p2492_p8 = pneg %p2604_p6 }
   0xf   : > { %p2493_p9 = pnand %p2492_p8, %p2491_p7 }
  0x11   : > { %p2494_p10 = pneg %p2493_p9 }
  0x13   : > { %p2499_p12 = pnand %p2497_p11, %p2494_p10 }
  0x15   : > { %2502 = shalt.err (!%p2499_p12)
}
  0x16   : > { %s2503_s29 = scalar_lea.vmem %s152_s20, 4608  ;;  %p2511_p2 = scmp.lt.s32.totalorder %s152_s20, %s152_s20 }
  0x17   : > { %p2504_p13 = scmp.ne.s32.totalorder %s152_s20, %s2503_s29  ;;  %p2512_p5 = scmp.lt.s32.totalorder %s2503_s29, %s2503_s29 }
  0x19   : > { %p2506_p0 = pnand %p2504_p13, %p2492_p8  ;;  %p2513_p4 = por %p2512_p5, %p2511_p2 }
  0x1b   : > { %p2507_p1 = pneg %p2506_p0 }
  0x1d   : > { %p2514_p3 = pnand %p2513_p4, %p2507_p1 }
  0x1f   : > { %2517 = shalt.err (!%p2514_p3)
}
  0x20   : > { %s2547_s30 = smov 64   ;;  %s2548_s4 = smov 4  }
  0x21   : > { %2399 = dma.hbm_to_vmem [thread:$0]  (!%p2604_p6), %s3069_s1, 4608, %s152_s20, [#allocation3], %s2547_s30, %s2547_s30, %s2548_s4  }
  0x22   : > { %p3078_p7 = scmp.ne.s32.totalorder %s3075_s17, 0 }
  0x23   : > { %p3079_p9 = scmp.ne.s32.totalorder (!%p3078_p7), %s3076_s18, 0 }
  0x24   : > { %181 = sbr.rel (%p3078_p7) target bundleno = 463 (0x1cf), region = 32 }
  0x2b   : > { %2531 = dma.done.wait (%p3079_p9), [#allocation3], 4608  }
  0x2c   : > { %2533 = vsyncadd (%p3079_p9), [#allocation3], 4294962688  ;;  %p211_p3 = scmp.lt.s32.totalorder %s2536_s12, 1  ;;  %v2549_v0 = vmov 0.0   ;;  %vm2550_vm0 = vmmov 0   ;;  %v2431_v1 = vld [vmem:[#allocation2 + $0x20] sm:$0xff]  }
  0x2d   : > { %2382 = vmatprep.subr.bf16.mxu1 %v2549_v0  ;;  %2130 = vmatprep.subr.bf16.mxu0 %v2549_v0  ;;  %v2432_v2 = vld [vmem:[#allocation2 + $0x28] sm:$0xff]   ;;  %vm284_vm1 = vsmask.f32 7424  ;;  %v2433_v5 = vld [vmem:[#allocation2 + $0x30] sm:$0xff]   ;;  %v2434_v11 = vld [vmem:[#allocation2 + $0x38] sm:$0xff]   ;;  %vm353_vm2 = vcmask 523264  }
  0x2e   : > { %2146 = vmatprep.mubr.msk.bf16.mxu1 %vm2550_vm0, %v2549_v0  ;;  %s3085_s12 = smov (!%p211_p3, %s2536_s12), 1  ;;  %2138 = vmatprep.mubr.msk.bf16.mxu0 %vm2550_vm0, %v2549_v0  ;;  %v2437_v23 = vld [vmem:[#allocation2] sm:$0xff]   ;;  %v2438_v32 = vld [vmem:[#allocation2 + $0x8] sm:$0xff]   ;;  %v2443_v36 = vld [vmem:[#allocation2 + $0x10] sm:$0xff]   ;;  %vm562_vm3 = vcmask 1046528   ;;  %vm1079_vm5 = vcmask 1045504  }
  0x2f   : > { %s2390_s7 = smul.u32 56, %s3085_s12  ;;  %2386 = vmatpush3.bf16.msra.mxu1 %v2431_v1  ;;  %2131 = vmatpush3.bf16.msra.mxu0 %v2431_v1  ;;  %v2442_v28 = vld [vmem:[#allocation2 + $0x40] sm:$0xff]   ;;  %v2444_v35 = vld [vmem:[#allocation2 + $0x48] sm:$0xff]   ;;  %v2446_v43 = vld [vmem:[#allocation2 + $0x50] sm:$0xff]   ;;  %vm890_vm4 = vsmask.f32 6400 }
  0x30   : > { %2383 = vmatprep.subr.bf16.mxu1 %v2549_v0  ;;  %2132 = vmatprep.subr.bf16.mxu0 %v2549_v0  ;;  %v2447_v47 = vld [vmem:[#allocation2 + $0x18] sm:$0xff]   ;;  %v2451_v53 = vld [vmem:[#allocation2 + $0x80] sm:$0xff]   ;;  %v2453_v55 = vld [vmem:[#allocation2 + $0x88] sm:$0xff]   ;;  %vm1596_vm6 = vcmask 1044480   ;;  %vm1407_vm7 = vsmask.f32 5376 }
  0x31   : > { %s2644_s10 = scalar_lea.vmem %s3068_s0, %s2390_s7  ;;  %v2448_v49 = vld [vmem:[#allocation2 + $0x58] sm:$0xff]   ;;  %v2450_v56 = vld [vmem:[#allocation2 + $0x60] sm:$0xff]   ;;  %v2455_v60 = vld [vmem:[#allocation2 + $0x90] sm:$0xff]   ;;  %s2391_s17 = smul.u32 40, %s3085_s12  ;;  %vm1797_vm8 = vcmask 519168  }
  0x32   : > { %v2649_v3 = vld [vmem:[%s2644_s10 + $0x10] sm:$0xff]   ;;  %v2652_v4 = vld [vmem:[%s2644_s10 + $0x18] sm:$0xff]   ;;  %v228_v9 = vld [vmem:[%s2644_s10] sm:$0xf] }
  0x33   : > { %2387 = vmatpush3.bf16.msra.mxu1 %v2432_v2  ;;  %2133 = vmatpush3.bf16.msra.mxu0 %v2432_v2  ;;  %v301_v6 = vshll.u32 %v2649_v3, 16  ;;  %v305_v7 = vshrl.u32 %v2649_v3, 16  ;;  %v309_v8 = vshll.u32 %v2652_v4, 16  ;;  %v2661_v10 = vld [vmem:[%s2644_s10 + $0x4] sm:$0xf]  ;;  %v2667_v15 = vld [vmem:[%s2644_s10 + $0x8] sm:$0xff]   ;;  %s3021_s20 = scalar_lea.vmem %s3071_s3, %s2391_s17 }
  0x34   : > { %2384 = vmatprep.subr.bf16.mxu1 %v2549_v0  ;;  %2134 = vmatprep.subr.bf16.mxu0 %v2549_v0  ;;  %v2664_v13 = vcombine.low %v228_v9, %v2661_v10  ;;  %v2674_v19 = vld [vmem:[%s2644_s10 + $0x20] sm:$0xff]   ;;  %v293_v20 = vshll.u32 %v2667_v15, 16  ;;  %v313_v25 = vshrl.u32 %v2652_v4, 16  ;;  %v297_v29 = vshrl.u32 %v2667_v15, 16  ;;  %v2452_v63 = vld [vmem:[#allocation2 + $0x68] sm:$0xff]  }
  0x35   : > { %v303_v12 = vrot.slane %v301_v6, 1  ;;  %v311_v14 = vrot.slane %v309_v8, 1  ;;  %v317_v26 = vshll.u32 %v2674_v19, 16  ;;  %v2684_v30 = vld [vmem:[%s2644_s10 + $0x28] ss:$0 sps:$4 sm:$0x11]  }
  0x36   : > { %v286_v17 = vshrl.u32 %v2664_v13, 16  ;;  %v288_v18 = vshll.u32 %v2664_v13, 16  ;;  %v295_v24 = vrot.slane %v293_v20, 1  ;;  %v549_v38 = vld [vmem:[%s2644_s10] sm:$0xe]  ;;  %v321_v40 = vshrl.u32 %v2674_v19, 16 }
  0x37   : > { %2388 = vmatpush3.bf16.msra.mxu1 %v2433_v5  ;;  %2135 = vmatpush3.bf16.msra.mxu0 %v2433_v5  ;;  %v307_v16 = vor.u32 %v305_v7, %v303_v12  ;;  %v315_v33 = vor.u32 %v313_v25, %v311_v14  ;;  %v319_v34 = vrot.slane %v317_v26, 1  ;;  %v325_v41 = vshll.u32 %v2684_v30, 16  ;;  %v2725_v57 = vld [vmem:[%s2644_s10 + $0x1c] sm:$0xff]   ;;  %v2728_v58 = vld [vmem:[%s2644_s10 + $0x24] sm:$0xff]   ;;  %v2454_v8 = vld [vmem:[#allocation2 + $0x70] sm:$0xff]  }
  0x38   : > { %2385 = vmatprep.subr.bf16.mxu1 %v2549_v0  ;;  %2136 = vmatprep.subr.bf16.mxu0 %v2549_v0  ;;  %v290_v21 = vrot.slane %v288_v18, 1  ;;  %v299_v37 = vor.u32 %v297_v29, %v295_v24  ;;  %v1946_v44 = vcombine.low %v549_v38, %v2661_v10  ;;  %v564_v48 = vrot.slane %v2667_v15, 1  ;;  %v2470_v1 = vld [vmem:[%s2644_s10 + $0x2c] ss:$0 sps:$4 sm:$0x11]   ;;  %v2457_v6 = vld [vmem:[#allocation2 + $0x98] sm:$0xff]  }
  0x39   : > { %v312_v22 = vsel %vm284_vm1, %v307_v16, %v311_v14  ;;  %v320_v39 = vsel %vm284_vm1, %v315_v33, %v319_v34  ;;  %v323_v45 = vor.u32 %v321_v40, %v319_v34  ;;  %v327_v46 = vrot.slane %v325_v41, 1  ;;  %v2767_v14 = vld [vmem:[%s2644_s10 + $0x8] sm:$0xf]  ;;  %v2461_v34 = vld [vmem:[#allocation2 + $0xc0] sm:$0xff]  }
  0x3a   : > { %v291_v27 = vor.u32 %v290_v21, %v286_v17  ;;  %v304_v42 = vsel %vm284_vm1, %v299_v37, %v303_v12  ;;  %v563_v50 = vrot.slane %v1946_v44, 1  ;;  %v566_v54 = vrot.slane %v2649_v3, 1  ;;  %v2773_v17 = vld [vmem:[%s2644_s10 + $0xc] sm:$0xff]  }
  0x3b   : > { %2389 = vmatpush3.bf16.msra.mxu1 %v2434_v11  ;;  %2137 = vmatpush3.bf16.msra.mxu0 %v2434_v11  ;;  %v328_v51 = vsel %vm284_vm1, %v323_v45, %v327_v46  ;;  %v749_v61 = vrot.slane %v2725_v57, 1  ;;  %v751_v62 = vrot.slane %v2728_v58, 1  ;;  %v568_v2 = vrot.slane %v2652_v4, 1  ;;  %v2456_v11 = vld [vmem:[#allocation2 + $0x78] sm:$0xff]   ;;  %v2467_v46 = vld [vmem:[#allocation2 + $0xd0] sm:$0xff]  }
  0x3c   : > { %2158 = vmatprep.subr.bf16.mxu1 %v2549_v0  ;;  %2186 = vmatprep.subr.bf16.mxu0 %v2549_v0  ;;  %v296_v31 = vsel %vm284_vm1, %v291_v27, %v295_v24  ;;  %v565_v52 = vsel %vm562_vm3, %v563_v50, %v564_v48  ;;  %v567_v59 = vsel %vm562_vm3, %v564_v48, %v566_v54  ;;  %v753_v7 = vrot.slane %v2470_v1, 1  ;;  %v2463_v48 = vld [vmem:[#allocation2 + $0xa8] sm:$0xff]  }
  0x3d   : > { %v2745_v5 = vsel %vm562_vm3, %v749_v61, %v751_v62  ;;  %v569_v10 = vsel %vm562_vm3, %v566_v54, %v568_v2  ;;  %v570_v12 = vrot.slane %v2674_v19, 1  ;;  %v572_v18 = vrot.slane %v2684_v30, 1  ;;  %v2466_v54 = vld [vmem:[#allocation2 + $0xb0] sm:$0xff]  }
  0x3e   : > { %2147 = vmatmul.mubr.msk.bf16.vlgmr.msra.gmra.mrb[0].mxu1 %vm353_vm2, %v312_v22  ;;  %2139 = vmatmul.mubr.msk.bf16.vlgmr.msra.gmra.mrb[0].mxu0 %vm353_vm2, %v296_v31  ;;  %v2751_v9 = vsel %vm562_vm3, %v751_v62, %v753_v7  ;;  %v900_v22 = vshrl.u32 %v2773_v17, 16  ;;  %v745_v37 = vrot.slane %v2773_v17, 1  ;;  %v918_v40 = vshrl.u32 %v2725_v57, 16  ;;  %v2469_v62 = vld [vmem:[#allocation2 + $0xb8] sm:$0xff]  }
  0x3f   : > { %2159 = vmatpush3.bf16.msra.mxu1 %v2437_v23  ;;  %2150 = vmatprep.mubr.msk.bf16.mxu1 %vm2550_vm0, %v2549_v0  ;;  %v903_v23 = vshll.u32 %v2773_v17, 16  ;;  %v573_v24 = vsel %vm562_vm3, %v570_v12, %v572_v18  ;;  %v921_v41 = vshll.u32 %v2725_v57, 16  ;;  %v927_v50 = vshrl.u32 %v2728_v58, 16  ;;  %v1066_v18 = vld [vmem:[%s2644_s10 + $0x4] sm:$0xc] }
  0x40   : > { %2160 = vmatprep.subr.bf16.mxu1 %v2549_v0  ;;  %2187 = vmatpush3.bf16.msra.mxu0 %v2442_v28  ;;  %v902_v26 = vrot.slane %v900_v22, 1  ;;  %v2787_v28 = vld [vmem:[%s2644_s10 + $0x14] sm:$0xff]   ;;  %v920_v44 = vrot.slane %v918_v40, 1  ;;  %v1981_v22 = vcombine.low %v1066_v18, %v2767_v14 }
  0x41   : > { %2142 = vmatprep.mubr.msk.bf16.mxu0 %vm2550_vm0, %v2549_v0  ;;  %2188 = vmatprep.subr.bf16.mxu0 %v2549_v0  ;;  %v905_v27 = vrot.slane %v903_v23, 2  ;;  %v909_v31 = vshrl.u32 %v2787_v28, 16  ;;  %v923_v45 = vrot.slane %v921_v41, 2 }
  0x43   : > { %2161 = vmatpush3.bf16.msra.mxu1 %v2438_v32  ;;  %v906_v30 = vor.u32 %v905_v27, %v902_v26  ;;  %v912_v32 = vshll.u32 %v2787_v28, 16  ;;  %v2480_v26 = vld [vmem:[#allocation2 + $0x108] sm:$0xff]  }
  0x44   : > { %2162 = vmatprep.subr.bf16.mxu1 %v2549_v0  ;;  %2189 = vmatpush3.bf16.msra.mxu0 %v2444_v35  ;;  %v911_v35 = vrot.slane %v909_v31, 1  ;;  %v1083_v31 = vrot.slane %v2787_v28, 2 }
  0x45   : > { %2190 = vmatprep.subr.bf16.mxu0 %v2549_v0 }
  0x46   : > { %2151 = vmatmul.mubr.msk.bf16.gmra.mrb[4].mxu1 %vm353_vm2, %v320_v39  ;;  %2143 = vmatmul.mubr.msk.bf16.gmra.mrb[4].mxu0 %vm353_vm2, %v304_v42  ;;  %v2464_v39 = vld [vmem:[#allocation2 + $0xc8] sm:$0xff]   ;;  %v2460_v42 = vld [vmem:[#allocation2 + $0xa0] sm:$0xff]  }
  0x47   : > { %2163 = vmatpush3.bf16.msra.mxu1 %v2443_v36  ;;  %2154 = vmatprep.mubr.msk.bf16.mxu1 %vm2550_vm0, %v2549_v0 }
  0x48   : > { %2164 = vmatprep.subr.bf16.mxu1 %v2549_v0  ;;  %2191 = vmatpush3.bf16.msra.mxu0 %v2446_v43 }
  0x49   : > { %2194 = vmatprep.mubr.msk.bf16.mxu0 %vm2550_vm0, %v2549_v0  ;;  %2192 = vmatprep.subr.bf16.mxu0 %v2549_v0 }
  0x4b   : > { %2165 = vmatpush3.bf16.msra.mxu1 %v2447_v47  ;;  %v747_v47 = vrot.slane %v2787_v28, 1 }
  0x4c   : > { %2214 = vmatprep.subr.bf16.mxu1 %v2549_v0  ;;  %2193 = vmatpush3.bf16.msra.mxu0 %v2448_v49  ;;  %v924_v49 = vor.u32 %v923_v45, %v920_v44 }
  0x4d   : > { %2242 = vmatprep.subr.bf16.mxu0 %v2549_v0 }
  0x4e   : > { %2155 = vmatmul.mubr.msk.bf16.gmra.mrb[8].mxu1 %vm353_vm2, %v328_v51  ;;  %v930_v51 = vshll.u32 %v2728_v58, 16 }
  0x4f   : > { %2166 = vmatprep.mubr.msk.bf16.mxu1 %vm2550_vm0, %v2549_v0  ;;  %2195 = vmatmul.mubr.msk.bf16.vlgmr.msra.gmra.mrb[8].mxu0 %vm353_vm2, %v565_v52  ;;  %v2472_v52 = vld [vmem:[#allocation2 + $0xd8] sm:$0xff]  }
  0x50   : > { %2243 = vmatpush3.bf16.msra.mxu0 %v2451_v53  ;;  %2198 = vmatprep.mubr.msk.bf16.mxu0 %vm2550_vm0, %v2549_v0  ;;  %v748_v53 = vsel %vm562_vm3, %v745_v37, %v747_v47 }
  0x51   : > { %2244 = vmatprep.subr.bf16.mxu0 %v2549_v0 }
  0x54   : > { %2245 = vmatpush3.bf16.msra.mxu0 %v2453_v55 }
  0x55   : > { %2246 = vmatprep.subr.bf16.mxu0 %v2549_v0 }
  0x56   : > { %2167 = vmatmul.mubr.msk.bf16.vlgmr.msra.gmra.mrb[12].mxu1 %vm353_vm2, %v2664_v13  ;;  %v696_v13 = vld [vmem:[%s2644_s10 + $0x4] sm:$0xe] }
  0x57   : > { %2215 = vmatpush3.bf16.msra.mxu1 %v2450_v56  ;;  %2170 = vmatprep.mubr.msk.bf16.mxu1 %vm2550_vm0, %v2549_v0  ;;  %v1956_v16 = vcombine.low %v696_v13, %v2767_v14  ;;  %v929_v56 = vrot.slane %v927_v50, 1 }
  0x58   : > { %2199 = vmatmul.mubr.msk.bf16.gmra.mrb[12].mxu0 %vm353_vm2, %v567_v59  ;;  %2216 = vmatprep.subr.bf16.mxu1 %v2549_v0  ;;  %v932_v59 = vrot.slane %v930_v51, 2 }
  0x59   : > { %2202 = vmatprep.mubr.msk.bf16.mxu0 %vm2550_vm0, %v2549_v0  ;;  %2247 = vmatpush3.bf16.msra.mxu0 %v2455_v60  ;;  %v892_v20 = vshrl.u32 %v1956_v16, 16  ;;  %v895_v21 = vshll.u32 %v1956_v16, 16  ;;  %v744_v36 = vrot.slane %v1956_v16, 1  ;;  %v2828_v60 = vld [vmem:[%s2644_s10 + $0x2c] ss:$0 sps:$4 sm:$0x33]  }
  0x5a   : > { %2248 = vmatprep.subr.bf16.mxu0 %v2549_v0  ;;  %v936_v1 = vshrl.u32 %v2828_v60, 16  ;;  %v2860_v16 = vld [vmem:[%s2644_s10 + $0x10] sm:$0xff]  }
  0x5b   : > { %2217 = vmatpush3.bf16.msra.mxu1 %v2452_v63  ;;  %v894_v25 = vrot.slane %v892_v20, 1  ;;  %v933_v63 = vor.u32 %v932_v59, %v929_v56  ;;  %v1420_v50 = vshll.u32 %v2860_v16, 16 }
  0x5c   : > { %2218 = vmatprep.subr.bf16.mxu1 %v2549_v0 }
  0x5d   : > { %2249 = vmatpush3.bf16.msra.mxu0 %v2457_v6  ;;  %v750_v6 = vsel %vm562_vm3, %v747_v47, %v749_v61  ;;  %v934_v7 = vsel %vm890_vm4, %v924_v49, %v933_v63  ;;  %v1213_v61 = vld [vmem:[%s2644_s10 + $0x8] sm:$0xc]  ;;  %v1089_v47 = vrot.slane %v2828_v60, 2  ;;  %v1422_v59 = vrot.slane %v1420_v50, 3 }
  0x5e   : > { %2171 = vmatmul.mubr.msk.bf16.gmra.mrb[16].mxu1 %vm353_vm2, %v2667_v15  ;;  %2298 = vmatprep.subr.bf16.mxu0 %v2549_v0  ;;  %v571_v15 = vsel %vm562_vm3, %v568_v2, %v570_v12  ;;  %v939_v2 = vshll.u32 %v2828_v60, 16  ;;  %v2853_v12 = vld [vmem:[%s2644_s10 + $0xc] sm:$0xf] }
  0x5f   : > { %2174 = vmatprep.mubr.msk.bf16.mxu1 %vm2550_vm0, %v2549_v0  ;;  %2219 = vmatpush3.bf16.msra.mxu1 %v2454_v8  ;;  %v938_v8 = vrot.slane %v936_v1, 1 }
  0x60   : > { %2203 = vmatmul.mubr.msk.bf16.gmra.mrb[16].mxu0 %vm353_vm2, %v569_v10  ;;  %2220 = vmatprep.subr.bf16.mxu1 %v2549_v0  ;;  %v941_v10 = vrot.slane %v939_v2, 2 }
  0x61   : > { %2206 = vmatprep.mubr.msk.bf16.mxu0 %vm2550_vm0, %v2549_v0 }
  0x63   : > { %2221 = vmatpush3.bf16.msra.mxu1 %v2456_v11  ;;  %v942_v11 = vor.u32 %v941_v10, %v938_v8 }
  0x64   : > { %2270 = vmatprep.subr.bf16.mxu1 %v2549_v0 }
  0x65   : > { %v943_v13 = vsel %vm890_vm4, %v933_v63, %v942_v11 }
  0x66   : > { %2175 = vmatmul.mubr.msk.bf16.gmra.mrb[20].mxu1 %vm353_vm2, %v2649_v3  ;;  %v897_v3 = vrot.slane %v895_v21, 2  ;;  %v1262_v21 = vrot.slane %v2860_v16, 2 }
  0x67   : > { %2178 = vmatprep.mubr.msk.bf16.mxu1 %vm2550_vm0, %v2549_v0 }
  0x68   : > { %2207 = vmatmul.mubr.msk.bf16.gmra.mrb[20].mxu0 %vm353_vm2, %v571_v15  ;;  %v898_v29 = vor.u32 %v897_v3, %v894_v25  ;;  %v2857_v15 = vcombine.low %v1213_v61, %v2853_v12  ;;  %v1080_v25 = vrot.slane %v1981_v22, 2  ;;  %v1081_v3 = vrot.slane %v2773_v17, 2  ;;  %v2483_v17 = vld [vmem:[#allocation2 + $0x110] sm:$0xff]  }
  0x69   : > { %2210 = vmatprep.mubr.msk.bf16.mxu0 %vm2550_vm0, %v2549_v0 }
  0x6a   : > { %v907_v33 = vsel %vm890_vm4, %v898_v29, %v906_v30  ;;  %v1261_v20 = vrot.slane %v2857_v15, 2  ;;  %v1082_v27 = vsel %vm1079_vm5, %v1080_v25, %v1081_v3 }
  0x6c   : > { %v1263_v23 = vsel %vm1079_vm5, %v1261_v20, %v1262_v21 }
  0x6e   : > { %2179 = vmatmul.mubr.msk.bf16.gmra.mrb[24].mxu1 %vm353_vm2, %v2652_v4  ;;  %v914_v4 = vrot.slane %v912_v32, 2  ;;  %v2479_v32 = vld [vmem:[#allocation2 + $0xe8] sm:$0xff]  }
  0x6f   : > { %2182 = vmatprep.mubr.msk.bf16.mxu1 %vm2550_vm0, %v2549_v0 }
  0x70   : > { %2211 = vmatmul.mubr.msk.bf16.gmra.mrb[24].mxu0 %vm353_vm2, %v573_v24  ;;  %v915_v38 = vor.u32 %v914_v4, %v911_v35  ;;  %v2477_v24 = vld [vmem:[#allocation2 + $0x100] sm:$0xff]   ;;  %v1084_v35 = vsel %vm1079_vm5, %v1081_v3, %v1083_v31  ;;  %v2482_v4 = vld [vmem:[#allocation2 + $0xf0] sm:$0xff]  }
  0x71   : > { %2250 = vmatprep.mubr.msk.bf16.mxu0 %vm2550_vm0, %v2549_v0 }
  0x72   : > { %v916_v43 = vsel %vm890_vm4, %v906_v30, %v915_v38  ;;  %v925_v55 = vsel %vm890_vm4, %v915_v38, %v924_v49  ;;  %v2890_v30 = vld [vmem:[%s2644_s10 + $0x20] sm:$0xff]   ;;  %v2485_v38 = vld [vmem:[#allocation2 + $0xf8] sm:$0xff]   ;;  %v1417_v49 = vshrl.u32 %v2860_v16, 16 }
  0x74   : > { %v1419_v56 = vrot.slane %v1417_v49, 2 }
  0x76   : > { %2183 = vmatmul.mubr.msk.bf16.gmra.mrb[28].mxu1 %vm353_vm2, %v2674_v19  ;;  %v746_v19 = vsel %vm562_vm3, %v744_v36, %v745_v37  ;;  %v2907_v36 = vld [vmem:[%s2644_s10 + $0x28] sm:$0xff]   ;;  %v1085_v37 = vrot.slane %v2725_v57, 2  ;;  %v1087_v57 = vrot.slane %v2728_v58, 2  ;;  %v1409_v58 = vshrl.u32 %v2857_v15, 16 }
  0x77   : > { %2222 = vmatprep.mubr.msk.bf16.mxu1 %vm2550_vm0, %v2549_v0  ;;  %v1423_v63 = vor.u32 %v1422_v59, %v1419_v56 }
  0x78   : > { %2251 = vmatmul.mubr.msk.bf16.vlgmr.msra.gmra.mrb[28].mxu0 %vm353_vm2, %v907_v33  ;;  %v1266_v33 = vrot.slane %v2890_v30, 2  ;;  %v1086_v40 = vsel %vm1079_vm5, %v1083_v31, %v1085_v37  ;;  %v1088_v44 = vsel %vm1079_vm5, %v1085_v37, %v1087_v57 }
  0x79   : > { %2299 = vmatpush3.bf16.msra.mxu0 %v2461_v34  ;;  %2254 = vmatprep.mubr.msk.bf16.mxu0 %vm2550_vm0, %v2549_v0  ;;  %v2487_v34 = vld [vmem:[#allocation2 + $0x118] sm:$0xff]  }
  0x7a   : > { %2300 = vmatprep.subr.bf16.mxu0 %v2549_v0 }
  0x7d   : > { %2301 = vmatpush3.bf16.msra.mxu0 %v2464_v39  ;;  %v1268_v39 = vrot.slane %v2907_v36, 2 }
  0x7e   : > { %2223 = vmatmul.mubr.msk.bf16.vlgmr.msra.gmra.mrb[32].mxu1 %vm353_vm2, %v746_v19  ;;  %2302 = vmatprep.subr.bf16.mxu0 %v2549_v0  ;;  %v2486_v19 = vld [vmem:[%s2644_s10 + $0x30] ss:$0 sps:$4 sm:$0x33]  }
  0x7f   : > { %2271 = vmatpush3.bf16.msra.mxu1 %v2460_v42  ;;  %2226 = vmatprep.mubr.msk.bf16.mxu1 %vm2550_vm0, %v2549_v0  ;;  %v1269_v41 = vsel %vm1079_vm5, %v1266_v33, %v1268_v39  ;;  %v1270_v42 = vrot.slane %v2486_v19, 2 }
  0x80   : > { %2255 = vmatmul.mubr.msk.bf16.gmra.mrb[32].mxu0 %vm353_vm2, %v916_v43  ;;  %2272 = vmatprep.subr.bf16.mxu1 %v2549_v0  ;;  %v1583_v43 = vld [vmem:[%s2644_s10 + $0x8] sm:$0x8] }
  0x81   : > { %2258 = vmatprep.mubr.msk.bf16.mxu0 %vm2550_vm0, %v2549_v0  ;;  %2303 = vmatpush3.bf16.msra.mxu0 %v2467_v46  ;;  %v1271_v45 = vsel %vm1079_vm5, %v1268_v39, %v1270_v42  ;;  %v2016_v46 = vcombine.low %v1583_v43, %v2853_v12  ;;  %v1435_v12 = vshrl.u32 %v2890_v30, 16 }
  0x82   : > { %2304 = vmatprep.subr.bf16.mxu0 %v2549_v0 }
  0x83   : > { %2273 = vmatpush3.bf16.msra.mxu1 %v2463_v48  ;;  %v1412_v48 = vshll.u32 %v2857_v15, 16  ;;  %v1597_v51 = vrot.slane %v2016_v46, 3  ;;  %v1602_v15 = vrot.slane %v2890_v30, 3  ;;  %v1437_v18 = vrot.slane %v1435_v12, 2 }
  0x84   : > { %2274 = vmatprep.subr.bf16.mxu1 %v2549_v0 }
  0x85   : > { %2305 = vmatpush3.bf16.msra.mxu0 %v2472_v52  ;;  %v1598_v52 = vrot.slane %v2860_v16, 3 }
  0x86   : > { %2227 = vmatmul.mubr.msk.bf16.gmra.mrb[36].mxu1 %vm353_vm2, %v748_v53  ;;  %2354 = vmatprep.subr.bf16.mxu0 %v2549_v0  ;;  %v1090_v53 = vsel %vm1079_vm5, %v1087_v57, %v1089_v47 }
  0x87   : > { %2230 = vmatprep.mubr.msk.bf16.mxu1 %vm2550_vm0, %v2549_v0  ;;  %2275 = vmatpush3.bf16.msra.mxu1 %v2466_v54  ;;  %v1411_v54 = vrot.slane %v1409_v58, 2  ;;  %v1599_v60 = vsel %vm1596_vm6, %v1597_v51, %v1598_v52 }
  0x88   : > { %2259 = vmatmul.mubr.msk.bf16.gmra.mrb[36].mxu0 %vm353_vm2, %v925_v55  ;;  %2276 = vmatprep.subr.bf16.mxu1 %v2549_v0  ;;  %v1414_v55 = vrot.slane %v1412_v48, 3 }
  0x89   : > { %2262 = vmatprep.mubr.msk.bf16.mxu0 %vm2550_vm0, %v2549_v0 }
  0x8b   : > { %2277 = vmatpush3.bf16.msra.mxu1 %v2469_v62  ;;  %v1415_v62 = vor.u32 %v1414_v55, %v1411_v54 }
  0x8c   : > { %2326 = vmatprep.subr.bf16.mxu1 %v2549_v0 }
  0x8e   : > { %2231 = vmatmul.mubr.msk.bf16.gmra.mrb[40].mxu1 %vm353_vm2, %v750_v6 }
  0x8f   : > { %2234 = vmatprep.mubr.msk.bf16.mxu1 %vm2550_vm0, %v2549_v0 }
  0x90   : > { %2263 = vmatmul.mubr.msk.bf16.gmra.mrb[40].mxu0 %vm353_vm2, %v934_v7  ;;  %v1424_v7 = vsel %vm1407_vm7, %v1415_v62, %v1423_v63 }
  0x91   : > { %2266 = vmatprep.mubr.msk.bf16.mxu0 %vm2550_vm0, %v2549_v0 }
  0x96   : > { %2235 = vmatmul.mubr.msk.bf16.gmra.mrb[44].mxu1 %vm353_vm2, %v2745_v5  ;;  %v2875_v5 = vld [vmem:[%s2644_s10 + $0x18] sm:$0xff]  }
  0x97   : > { %2238 = vmatprep.mubr.msk.bf16.mxu1 %vm2550_vm0, %v2549_v0  ;;  %v1264_v14 = vrot.slane %v2875_v5, 2  ;;  %v1426_v1 = vshrl.u32 %v2875_v5, 16  ;;  %v1429_v2 = vshll.u32 %v2875_v5, 16  ;;  %v1600_v6 = vrot.slane %v2875_v5, 3 }
  0x98   : > { %2267 = vmatmul.mubr.msk.bf16.gmra.mrb[44].mxu0 %vm353_vm2, %v943_v13  ;;  %v1438_v13 = vshll.u32 %v2890_v30, 16  ;;  %v1604_v5 = vrot.slane %v2907_v36, 3 }
  0x99   : > { %2306 = vmatprep.mubr.msk.bf16.mxu0 %vm2550_vm0, %v2549_v0  ;;  %v1265_v29 = vsel %vm1079_vm5, %v1262_v21, %v1264_v14  ;;  %v1267_v28 = vsel %vm1079_vm5, %v1264_v14, %v1266_v33  ;;  %v1428_v8 = vrot.slane %v1426_v1, 2  ;;  %v1431_v10 = vrot.slane %v1429_v2, 3 }
  0x9a   : > { %v1601_v11 = vsel %vm1596_vm6, %v1598_v52, %v1600_v6  ;;  %v1440_v20 = vrot.slane %v1438_v13, 3  ;;  %v1603_v21 = vsel %vm1596_vm6, %v1600_v6, %v1602_v15 }
  0x9b   : > { %v1432_v61 = vor.u32 %v1431_v10, %v1428_v8 }
  0x9c   : > { %v1441_v22 = vor.u32 %v1440_v20, %v1437_v18 }
  0x9d   : > { %v1433_v16 = vsel %vm1407_vm7, %v1423_v63, %v1432_v61 }
  0x9e   : > { %2239 = vmatmul.mubr.msk.bf16.gmra.mrb[48].mxu1 %vm353_vm2, %v2751_v9  ;;  %v2476_v9 = vld [vmem:[#allocation2 + $0xe0] sm:$0xff]   ;;  %v1442_v25 = vsel %vm1407_vm7, %v1432_v61, %v1441_v22 }
  0x9f   : > { %2278 = vmatprep.mubr.msk.bf16.mxu1 %vm2550_vm0, %v2549_v0 }
  0xa0   : > { %2307 = vmatmul.mubr.msk.bf16.vlgmr.msra.gmra.mrb[48].mxu0 %vm353_vm2, %v1263_v23  ;;  %v1444_v23 = vshrl.u32 %v2907_v36, 16 }
  0xa1   : > { %2355 = vmatpush3.bf16.msra.mxu0 %v2477_v24  ;;  %2310 = vmatprep.mubr.msk.bf16.mxu0 %vm2550_vm0, %v2549_v0  ;;  %v1447_v24 = vshll.u32 %v2907_v36, 16 }
  0xa2   : > { %2356 = vmatprep.subr.bf16.mxu0 %v2549_v0  ;;  %v1446_v3 = vrot.slane %v1444_v23, 2 }
  0xa3   : > { %v1449_v14 = vrot.slane %v1447_v24, 3 }
  0xa5   : > { %2357 = vmatpush3.bf16.msra.mxu0 %v2480_v26  ;;  %v2489_v26 = vld [vmem:[%s2644_s10 + $0x30] ss:$0 sps:$4 sm:$0x77]  }
  0xa6   : > { %2279 = vmatmul.mubr.msk.bf16.vlgmr.msra.gmra.mrb[52].mxu1 %vm353_vm2, %v1082_v27  ;;  %2358 = vmatprep.subr.bf16.mxu0 %v2549_v0  ;;  %v1605_v27 = vsel %vm1596_vm6, %v1602_v15, %v1604_v5  ;;  %v1456_v30 = vshll.u32 %v2489_v26, 16 }
  0xa7   : > { %2327 = vmatpush3.bf16.msra.mxu1 %v2476_v9  ;;  %2282 = vmatprep.mubr.msk.bf16.mxu1 %vm2550_vm0, %v2549_v0  ;;  %v1450_v9 = vor.u32 %v1449_v14, %v1446_v3 }
  0xa8   : > { %2311 = vmatmul.mubr.msk.bf16.gmra.mrb[52].mxu0 %vm353_vm2, %v1265_v29  ;;  %2328 = vmatprep.subr.bf16.mxu1 %v2549_v0  ;;  %v1453_v29 = vshrl.u32 %v2489_v26, 16  ;;  %v1458_v33 = vrot.slane %v1456_v30, 3 }
  0xa9   : > { %2314 = vmatprep.mubr.msk.bf16.mxu0 %vm2550_vm0, %v2549_v0  ;;  %2359 = vmatpush3.bf16.msra.mxu0 %v2483_v17  ;;  %v1606_v17 = vrot.slane %v2489_v26, 3  ;;  %v1451_v31 = vsel %vm1407_vm7, %v1441_v22, %v1450_v9 }
  0xaa   : > { %2360 = vmatprep.subr.bf16.mxu0 %v2549_v0 }
  0xab   : > { %2329 = vmatpush3.bf16.msra.mxu1 %v2479_v32  ;;  %v1455_v32 = vrot.slane %v1453_v29, 2 }
  0xac   : > { %2330 = vmatprep.subr.bf16.mxu1 %v2549_v0 }
  0xad   : > { %2361 = vmatpush3.bf16.msra.mxu0 %v2487_v34  ;;  %v1607_v34 = vsel %vm1596_vm6, %v1604_v5, %v1606_v17 }
  0xae   : > { %2283 = vmatmul.mubr.msk.bf16.gmra.mrb[56].mxu1 %vm353_vm2, %v1084_v35  ;;  %v1459_v35 = vor.u32 %v1458_v33, %v1455_v32 }
  0xaf   : > { %2286 = vmatprep.mubr.msk.bf16.mxu1 %vm2550_vm0, %v2549_v0  ;;  %2331 = vmatpush3.bf16.msra.mxu1 %v2482_v4 }
  0xb0   : > { %2315 = vmatmul.mubr.msk.bf16.gmra.mrb[56].mxu0 %vm353_vm2, %v1267_v28  ;;  %2332 = vmatprep.subr.bf16.mxu1 %v2549_v0  ;;  %v1460_v4 = vsel %vm1407_vm7, %v1450_v9, %v1459_v35 }
  0xb1   : > { %2318 = vmatprep.mubr.msk.bf16.mxu0 %vm2550_vm0, %v2549_v0 }
  0xb3   : > { %2333 = vmatpush3.bf16.msra.mxu1 %v2485_v38 }
  0xb6   : > { %2287 = vmatmul.mubr.msk.bf16.gmra.mrb[60].mxu1 %vm353_vm2, %v1086_v40 }
  0xb7   : > { %2290 = vmatprep.mubr.msk.bf16.mxu1 %vm2550_vm0, %v2549_v0 }
  0xb8   : > { %2319 = vmatmul.mubr.msk.bf16.gmra.mrb[60].mxu0 %vm353_vm2, %v1269_v41 }
  0xb9   : > { %2322 = vmatprep.mubr.msk.bf16.mxu0 %vm2550_vm0, %v2549_v0 }
  0xbe   : > { %2291 = vmatmul.mubr.msk.bf16.gmra.mrb[64].mxu1 %vm353_vm2, %v1088_v44 }
  0xbf   : > { %2294 = vmatprep.mubr.msk.bf16.mxu1 %vm2550_vm0, %v2549_v0 }
  0xc0   : > { %2323 = vmatmul.mubr.msk.bf16.gmra.mrb[64].mxu0 %vm353_vm2, %v1271_v45 }
  0xc1   : > { %2362 = vmatprep.mubr.msk.bf16.mxu0 %vm2550_vm0, %v2549_v0 }
  0xc6   : > { %2295 = vmatmul.mubr.msk.bf16.gmra.mrb[68].mxu1 %vm353_vm2, %v1090_v53 }
  0xc7   : > { %2334 = vmatprep.mubr.msk.bf16.mxu1 %vm2550_vm0, %v2549_v0 }
  0xc8   : > { %2363 = vmatmul.mubr.msk.bf16.vlgmr.msra.gmra.mrb[68].mxu0 %vm353_vm2, %v1599_v60 }
  0xc9   : > { %2366 = vmatprep.mubr.msk.bf16.mxu0 %vm2550_vm0, %v2549_v0 }
  0xce   : > { %2335 = vmatmul.mubr.msk.bf16.vlgmr.msra.gmra.mrb[72].mxu1 %vm353_vm2, %v1424_v7 }
  0xcf   : > { %2338 = vmatprep.mubr.msk.bf16.mxu1 %vm2550_vm0, %v2549_v0 }
  0xd0   : > { %2367 = vmatmul.mubr.msk.bf16.gmra.mrb[72].mxu0 %vm353_vm2, %v1601_v11 }
  0xd1   : > { %2370 = vmatprep.mubr.msk.bf16.mxu0 %vm2550_vm0, %v2549_v0 }
  0xd6   : > { %2339 = vmatmul.mubr.msk.bf16.gmra.mrb[76].mxu1 %vm353_vm2, %v1433_v16 }
  0xd7   : > { %2342 = vmatprep.mubr.msk.bf16.mxu1 %vm2550_vm0, %v2549_v0 }
  0xd8   : > { %2371 = vmatmul.mubr.msk.bf16.gmra.mrb[76].mxu0 %vm353_vm2, %v1603_v21 }
  0xd9   : > { %2374 = vmatprep.mubr.msk.bf16.mxu0 %vm2550_vm0, %v2549_v0 }
  0xde   : > { %2343 = vmatmul.mubr.msk.bf16.gmra.mrb[80].mxu1 %vm353_vm2, %v1442_v25 }
  0xdf   : > { %2346 = vmatprep.mubr.msk.bf16.mxu1 %vm2550_vm0, %v2549_v0 }
  0xe0   : > { %2375 = vmatmul.mubr.msk.bf16.gmra.mrb[80].mxu0 %vm353_vm2, %v1605_v27 }
  0xe1   : > { %2378 = vmatprep.mubr.msk.bf16.mxu0 %vm2550_vm0, %v2549_v0 }
  0xe6   : > { %2347 = vmatmul.mubr.msk.bf16.gmra.mrb[84].mxu1 %vm353_vm2, %v1451_v31 }
  0xe7   : > { %2350 = vmatprep.mubr.msk.bf16.mxu1 %vm2550_vm0, %v2549_v0 }
  0xe8   : > { %2379 = vmatmul.mubr.msk.bf16.gmra.mrb[84].mxu0 %vm353_vm2, %v1607_v34 }
  0xee   : > { %2351 = vmatmul.mubr.msk.bf16.gmra.mrb[88].mxu1 %vm353_vm2, %v1460_v4 }
 0x111   : > { %v419_v28 = vpop.f32.mrb[0].mxu1  ;;  %v403_v38 = vpop.f32.mrb[0].mxu0 }
 0x112   : > { %v2148_v36 = vpop.f32.mrb[1].mxu1  ;;  %v2140_v40 = vpop.f32.mrb[1].mxu0 }
 0x113   : > { %v422_v37 = vpop.f32.mrb[2].mxu1  ;;  %v406_v41 = vpop.f32.mrb[2].mxu0 }
 0x114   : > { %v2149_v39 = vpop.f32.mrb[3].mxu1  ;;  %v2141_v19 = vpop.f32.mrb[3].mxu0 }
 0x119   : > { %v427_v57 = vpop.f32.mrb[4].mxu1  ;;  %v411_v44 = vpop.f32.mrb[4].mxu0 }
 0x11a   : > { %v2152_v42 = vpop.f32.mrb[5].mxu1  ;;  %v2144_v45 = vpop.f32.mrb[5].mxu0 }
 0x11b   : > { %v430_v43 = vpop.f32.mrb[6].mxu1  ;;  %v414_v46 = vpop.f32.mrb[6].mxu0 }
 0x11c   : > { %v2153_v0 = vpop.f32.mrb[7].mxu1  ;;  %v2145_v47 = vpop.f32.mrb[7].mxu0 }
 0x121   : > { %v435_v58 = vpop.f32.mrb[8].mxu1 }
 0x122   : > { %v2156_v48 = vpop.f32.mrb[9].mxu1  ;;  %v647_v50 = vpop.f32.mrb[8].mxu0 }
 0x123   : > { %v438_v49 = vpop.f32.mrb[10].mxu1  ;;  %v2196_v52 = vpop.f32.mrb[9].mxu0 }
 0x124   : > { %v2157_v51 = vpop.f32.mrb[11].mxu1  ;;  %v650_v53 = vpop.f32.mrb[10].mxu0 }
 0x125   : > { %v2197_v54 = vpop.f32.mrb[11].mxu0 }
 0x129   : > { %v510_v55 = vpop.f32.mrb[12].mxu1 }
 0x12a   : > { %v511_v56 = vadd.f32 %v510_v55, %v403_v38  ;;  %v2168_v59 = vpop.f32.mrb[13].mxu1 }
 0x12b   : > { %v513_v60 = vpop.f32.mrb[14].mxu1  ;;  %v655_v62 = vpop.f32.mrb[12].mxu0 }
 0x12c   : > { %v686_v63 = vadd.f32 %v647_v50, %v511_v56  ;;  %v514_v1 = vadd.f32 %v513_v60, %v406_v41  ;;  %v2169_v2 = vpop.f32.mrb[15].mxu1  ;;  %v2200_v6 = vpop.f32.mrb[13].mxu0 }
 0x12d   : > { %v658_v7 = vpop.f32.mrb[14].mxu0 }
 0x12e   : > { %v687_v8 = vadd.f32 %v650_v53, %v514_v1  ;;  %v2201_v10 = vpop.f32.mrb[15].mxu0 }
 0x131   : > { %v518_v11 = vpop.f32.mrb[16].mxu1 }
 0x132   : > { %v519_v61 = vadd.f32 %v518_v11, %v411_v44  ;;  %v2172_v12 = vpop.f32.mrb[17].mxu1 }
 0x133   : > { %v521_v13 = vpop.f32.mrb[18].mxu1  ;;  %v663_v15 = vpop.f32.mrb[16].mxu0 }
 0x134   : > { %v688_v16 = vadd.f32 %v655_v62, %v519_v61  ;;  %v522_v18 = vadd.f32 %v521_v13, %v414_v46  ;;  %v2173_v20 = vpop.f32.mrb[19].mxu1  ;;  %v2204_v21 = vpop.f32.mrb[17].mxu0 }
 0x135   : > { %v666_v22 = vpop.f32.mrb[18].mxu0 }
 0x136   : > { %v689_v23 = vadd.f32 %v658_v7, %v522_v18  ;;  %v2205_v24 = vpop.f32.mrb[19].mxu0 }
 0x139   : > { %v526_v5 = vpop.f32.mrb[20].mxu1 }
 0x13a   : > { %v527_v25 = vadd.f32 %v526_v5, %v419_v28  ;;  %v2176_v3 = vpop.f32.mrb[21].mxu1 }
 0x13b   : > { %v529_v14 = vpop.f32.mrb[22].mxu1  ;;  %v671_v26 = vpop.f32.mrb[20].mxu0 }
 0x13c   : > { %v690_v27 = vadd.f32 %v663_v15, %v527_v25  ;;  %v530_v9 = vadd.f32 %v529_v14, %v422_v37  ;;  %v2177_v29 = vpop.f32.mrb[23].mxu1  ;;  %v2208_v30 = vpop.f32.mrb[21].mxu0 }
 0x13d   : > { %v674_v17 = vpop.f32.mrb[22].mxu0 }
 0x13e   : > { %v691_v31 = vadd.f32 %v666_v22, %v530_v9  ;;  %v2209_v32 = vpop.f32.mrb[23].mxu0 }
 0x141   : > { %v534_v33 = vpop.f32.mrb[24].mxu1 }
 0x142   : > { %v535_v34 = vadd.f32 %v534_v33, %v427_v57  ;;  %v2180_v35 = vpop.f32.mrb[25].mxu1 }
 0x143   : > { %v537_v4 = vpop.f32.mrb[26].mxu1  ;;  %v679_v36 = vpop.f32.mrb[24].mxu0 }
 0x144   : > { %v692_v38 = vadd.f32 %v671_v26, %v535_v34  ;;  %v538_v39 = vadd.f32 %v537_v4, %v430_v43  ;;  %v2181_v40 = vpop.f32.mrb[27].mxu1  ;;  %v2212_v41 = vpop.f32.mrb[25].mxu0 }
 0x145   : > { %v682_v28 = vpop.f32.mrb[26].mxu0 }
 0x146   : > { %v693_v19 = vadd.f32 %v674_v17, %v538_v39  ;;  %v2213_v42 = vpop.f32.mrb[27].mxu0 }
 0x149   : > { %v542_v44 = vpop.f32.mrb[28].mxu1 }
 0x14a   : > { %v543_v0 = vadd.f32 %v542_v44, %v435_v58  ;;  %v2184_v37 = vpop.f32.mrb[29].mxu1 }
 0x14b   : > { %v545_v45 = vpop.f32.mrb[30].mxu1  ;;  %v1017_v46 = vpop.f32.mrb[28].mxu0 }
 0x14c   : > { %v694_v47 = vadd.f32 %v679_v36, %v543_v0  ;;  %v546_v48 = vadd.f32 %v545_v45, %v438_v49  ;;  %v2185_v50 = vpop.f32.mrb[31].mxu1  ;;  %v2252_v51 = vpop.f32.mrb[29].mxu0 }
 0x14d   : > { %v1020_v57 = vpop.f32.mrb[30].mxu0 }
 0x14e   : > { %v695_v52 = vadd.f32 %v682_v28, %v546_v48  ;;  %v2253_v53 = vpop.f32.mrb[31].mxu0 }
 0x151   : > { %v828_v54 = vpop.f32.mrb[32].mxu1 }
 0x152   : > { %v867_v55 = vadd.f32 %v828_v54, %v686_v63  ;;  %v2224_v43 = vpop.f32.mrb[33].mxu1 }
 0x153   : > { %v831_v56 = vpop.f32.mrb[34].mxu1  ;;  %v1025_v59 = vpop.f32.mrb[32].mxu0 }
 0x154   : > { %v1056_v60 = vadd.f32 %v1017_v46, %v867_v55  ;;  %v868_v62 = vadd.f32 %v831_v56, %v687_v8  ;;  %v2225_v1 = vpop.f32.mrb[35].mxu1  ;;  %v2256_v2 = vpop.f32.mrb[33].mxu0 }
 0x155   : > { %v1028_v58 = vpop.f32.mrb[34].mxu0 }
 0x156   : > { %v1057_v6 = vadd.f32 %v1020_v57, %v868_v62  ;;  %v2257_v7 = vpop.f32.mrb[35].mxu0 }
 0x159   : > { %v836_v10 = vpop.f32.mrb[36].mxu1 }
 0x15a   : > { %v869_v11 = vadd.f32 %v836_v10, %v688_v16  ;;  %v2228_v49 = vpop.f32.mrb[37].mxu1 }
 0x15b   : > { %v839_v61 = vpop.f32.mrb[38].mxu1  ;;  %v1033_v12 = vpop.f32.mrb[36].mxu0 }
 0x15c   : > { %v1058_v13 = vadd.f32 %v1025_v59, %v869_v11  ;;  %v870_v15 = vadd.f32 %v839_v61, %v689_v23  ;;  %v2229_v18 = vpop.f32.mrb[39].mxu1  ;;  %v2260_v20 = vpop.f32.mrb[37].mxu0 }
 0x15d   : > { %v1036_v63 = vpop.f32.mrb[38].mxu0 }
 0x15e   : > { %v1059_v21 = vadd.f32 %v1028_v58, %v870_v15  ;;  %v2261_v22 = vpop.f32.mrb[39].mxu0 }
 0x161   : > { %v844_v24 = vpop.f32.mrb[40].mxu1 }
 0x162   : > { %v871_v5 = vadd.f32 %v844_v24, %v690_v27  ;;  %v2232_v8 = vpop.f32.mrb[41].mxu1 }
 0x163   : > { %v847_v25 = vpop.f32.mrb[42].mxu1  ;;  %v1041_v3 = vpop.f32.mrb[40].mxu0 }
 0x164   : > { %v1060_v14 = vadd.f32 %v1033_v12, %v871_v5  ;;  %v872_v26 = vadd.f32 %v847_v25, %v691_v31  ;;  %v2233_v9 = vpop.f32.mrb[43].mxu1  ;;  %v2264_v29 = vpop.f32.mrb[41].mxu0 }
 0x165   : > { %v1044_v16 = vpop.f32.mrb[42].mxu0 }
 0x166   : > { %v1061_v30 = vadd.f32 %v1036_v63, %v872_v26  ;;  %v2265_v17 = vpop.f32.mrb[43].mxu0 }
 0x169   : > { %v852_v32 = vpop.f32.mrb[44].mxu1 }
 0x16a   : > { %v873_v33 = vadd.f32 %v852_v32, %v692_v38  ;;  %v2236_v23 = vpop.f32.mrb[45].mxu1 }
 0x16b   : > { %v855_v34 = vpop.f32.mrb[46].mxu1  ;;  %v1049_v35 = vpop.f32.mrb[44].mxu0 }
 0x16c   : > { %v1062_v4 = vadd.f32 %v1041_v3, %v873_v33  ;;  %v874_v36 = vadd.f32 %v855_v34, %v693_v19  ;;  %v2237_v39 = vpop.f32.mrb[47].mxu1  ;;  %v2268_v40 = vpop.f32.mrb[45].mxu0 }
 0x16d   : > { %v1052_v27 = vpop.f32.mrb[46].mxu0 }
 0x16e   : > { %v1063_v41 = vadd.f32 %v1044_v16, %v874_v36  ;;  %v2269_v28 = vpop.f32.mrb[47].mxu0 }
 0x171   : > { %v860_v42 = vpop.f32.mrb[48].mxu1 }
 0x172   : > { %v875_v44 = vadd.f32 %v860_v42, %v694_v47  ;;  %v2240_v31 = vpop.f32.mrb[49].mxu1 }
 0x173   : > { %v863_v0 = vpop.f32.mrb[50].mxu1  ;;  %v1345_v37 = vpop.f32.mrb[48].mxu0 }
 0x174   : > { %v1064_v45 = vadd.f32 %v1049_v35, %v875_v44  ;;  %v876_v46 = vadd.f32 %v863_v0, %v695_v52  ;;  %v2241_v48 = vpop.f32.mrb[51].mxu1  ;;  %v2308_v50 = vpop.f32.mrb[49].mxu0 }
 0x175   : > { %v1348_v38 = vpop.f32.mrb[50].mxu0 }
 0x176   : > { %v1065_v51 = vadd.f32 %v1052_v27, %v876_v46  ;;  %v2309_v57 = vpop.f32.mrb[51].mxu0 }
 0x179   : > { %v1164_v53 = vpop.f32.mrb[52].mxu1 }
 0x17a   : > { %v1203_v54 = vadd.f32 %v1164_v53, %v1056_v60  ;;  %v2280_v19 = vpop.f32.mrb[53].mxu1 }
 0x17b   : > { %v1167_v55 = vpop.f32.mrb[54].mxu1  ;;  %v1353_v43 = vpop.f32.mrb[52].mxu0 }
 0x17c   : > { %v1384_v56 = vadd.f32 %v1345_v37, %v1203_v54  ;;  %v1204_v59 = vadd.f32 %v1167_v55, %v1057_v6  ;;  %v2281_v62 = vpop.f32.mrb[55].mxu1  ;;  %v2312_v1 = vpop.f32.mrb[53].mxu0 }
 0x17d   : > { %v1356_v47 = vpop.f32.mrb[54].mxu0 }
 0x17e   : > { %v1385_v2 = vadd.f32 %v1348_v38, %v1204_v59  ;;  %v2313_v58 = vpop.f32.mrb[55].mxu0 }
 0x181   : > { %v1172_v7 = vpop.f32.mrb[56].mxu1 }
 0x182   : > { %v1205_v10 = vadd.f32 %v1172_v7, %v1058_v13  ;;  %v2284_v52 = vpop.f32.mrb[57].mxu1 }
 0x183   : > { %v1175_v11 = vpop.f32.mrb[58].mxu1  ;;  %v1361_v49 = vpop.f32.mrb[56].mxu0 }
 0x184   : > { %v2994_v61 = vadd.f32 %v1353_v43, %v1205_v10  ;;  %v1206_v12 = vadd.f32 %v1175_v11, %v1059_v21  ;;  %v2285_v15 = vpop.f32.mrb[59].mxu1  ;;  %v2316_v60 = vpop.f32.mrb[57].mxu0 }
 0x185   : > { %v1364_v18 = vpop.f32.mrb[58].mxu0 }
 0x186   : > { %v2996_v20 = vadd.f32 %v1356_v47, %v1206_v12  ;;  %v2317_v63 = vpop.f32.mrb[59].mxu0 }
 0x189   : > { %v1180_v6 = vpop.f32.mrb[60].mxu1 }
 0x18a   : > { %v1207_v22 = vadd.f32 %v1180_v6, %v1060_v14  ;;  %v2288_v24 = vpop.f32.mrb[61].mxu1 }
 0x18b   : > { %v1183_v5 = vpop.f32.mrb[62].mxu1  ;;  %v1369_v8 = vpop.f32.mrb[60].mxu0 }
 0x18c   : > { %v2998_v25 = vadd.f32 %v1361_v49, %v1207_v22  ;;  %v1208_v13 = vadd.f32 %v1183_v5, %v1061_v30  ;;  %v2289_v3 = vpop.f32.mrb[63].mxu1  ;;  %v2320_v26 = vpop.f32.mrb[61].mxu0 }
 0x18d   : > { %v1372_v9 = vpop.f32.mrb[62].mxu0 }
 0x18e   : > { %v3000_v29 = vadd.f32 %v1364_v18, %v1208_v13  ;;  %v2321_v21 = vpop.f32.mrb[63].mxu0 }
 0x191   : > { %v1188_v16 = vpop.f32.mrb[64].mxu1 }
 0x192   : > { %v1209_v17 = vadd.f32 %v1188_v16, %v1062_v4  ;;  %v2292_v32 = vpop.f32.mrb[65].mxu1 }
 0x193   : > { %v1191_v33 = vpop.f32.mrb[66].mxu1  ;;  %v1377_v23 = vpop.f32.mrb[64].mxu0 }
 0x194   : > { %v3002_v34 = vadd.f32 %v1369_v8, %v1209_v17  ;;  %v1210_v14 = vadd.f32 %v1191_v33, %v1063_v41  ;;  %v2293_v35 = vpop.f32.mrb[67].mxu1  ;;  %v2324_v36 = vpop.f32.mrb[65].mxu0 }
 0x195   : > { %v1380_v39 = vpop.f32.mrb[66].mxu0 }
 0x196   : > { %v3004_v40 = vadd.f32 %v1372_v9, %v1210_v14  ;;  %v2325_v30 = vpop.f32.mrb[67].mxu0 }
 0x199   : > { %v1196_v27 = vpop.f32.mrb[68].mxu1 }
 0x19a   : > { %v1211_v28 = vadd.f32 %v1196_v27, %v1064_v45  ;;  %v2296_v42 = vpop.f32.mrb[69].mxu1  ;;  %v3013_v45 = vld [vmem:[%s3070_s2] ss:$0 sm:$0xff] }
 0x19b   : > { %v1199_v44 = vpop.f32.mrb[70].mxu1  ;;  %v1681_v31 = vpop.f32.mrb[68].mxu0 }
 0x19c   : > { %v3006_v0 = vadd.f32 %v1377_v23, %v1211_v28  ;;  %v1212_v4 = vadd.f32 %v1199_v44, %v1065_v51  ;;  %v2297_v37 = vpop.f32.mrb[71].mxu1  ;;  %v2364_v46 = vpop.f32.mrb[69].mxu0 }
 0x19d   : > { %v1684_v48 = vpop.f32.mrb[70].mxu0 }
 0x19e   : > { %v3008_v50 = vadd.f32 %v1380_v39, %v1212_v4  ;;  %v2365_v41 = vpop.f32.mrb[71].mxu0 }
 0x1a1   : > { %v1534_v38 = vpop.f32.mrb[72].mxu1 }
 0x1a2   : > { %v1573_v57 = vadd.f32 %v1534_v38, %v1384_v56  ;;  %v2336_v53 = vpop.f32.mrb[73].mxu1 }
 0x1a3   : > { %v1537_v54 = vpop.f32.mrb[74].mxu1  ;;  %v1689_v19 = vpop.f32.mrb[72].mxu0 }
 0x1a4   : > { %v1720_v55 = vadd.f32 %v1681_v31, %v1573_v57  ;;  %v1574_v43 = vadd.f32 %v1537_v54, %v1385_v2  ;;  %v2337_v51 = vpop.f32.mrb[75].mxu1  ;;  %v2368_v59 = vpop.f32.mrb[73].mxu0 }
 0x1a5   : > { %v1692_v62 = vpop.f32.mrb[74].mxu0 }
 0x1a6   : > { %v1737_v1 = vadd.f32 %v3013_v45, %v1720_v55  ;;  %v1721_v47 = vadd.f32 %v1684_v48, %v1574_v43  ;;  %v2369_v58 = vpop.f32.mrb[75].mxu0 }
 0x1a8   : > { %v1747_v7 = vmax.f32 %v1737_v1, 0.0  ;;  %v1738_v56 = vadd.f32 %v3013_v45, %v1721_v47 }
 0x1a9   : > { %v1542_v2 = vpop.f32.mrb[76].mxu1 }
 0x1aa   : > { %v2039_v10 = vpack.c.bf16 %v1747_v7, %v1747_v7  ;;  %v1748_v52 = vmax.f32 %v1738_v56, 0.0  ;;  %v1575_v11 = vadd.f32 %v1542_v2, %v2994_v61  ;;  %v2340_v49 = vpop.f32.mrb[77].mxu1 }
 0x1ab   : > { %v1545_v12 = vpop.f32.mrb[78].mxu1  ;;  %v1697_v15 = vpop.f32.mrb[76].mxu0 }
 0x1ac   : > { %1798 = vst.msk [vmem:[%s3021_s20] sm:$0xf] %vm1797_vm8, %v2039_v10  ;;  %v2040_v60 = vpack.c.bf16 %v1748_v52, %v1748_v52  ;;  %v1722_v18 = vadd.f32 %v1689_v19, %v1575_v11  ;;  %v1576_v63 = vadd.f32 %v1545_v12, %v2996_v20  ;;  %v2341_v6 = vpop.f32.mrb[79].mxu1  ;;  %v2372_v22 = vpop.f32.mrb[77].mxu0 }
 0x1ad   : > { %v1700_v24 = vpop.f32.mrb[78].mxu0 }
 0x1ae   : > { %1799 = vst.msk [vmem:[%s3021_s20 + $0x4] sm:$0xf] %vm1797_vm8, %v2040_v60  ;;  %v1739_v5 = vadd.f32 %v3013_v45, %v1722_v18  ;;  %v1723_v8 = vadd.f32 %v1692_v62, %v1576_v63  ;;  %v2373_v13 = vpop.f32.mrb[79].mxu0 }
 0x1b0   : > { %v1749_v61 = vmax.f32 %v1739_v5, 0.0  ;;  %v1740_v3 = vadd.f32 %v3013_v45, %v1723_v8 }
 0x1b1   : > { %v1550_v26 = vpop.f32.mrb[80].mxu1 }
 0x1b2   : > { %v2041_v9 = vpack.c.bf16 %v1749_v61, %v1749_v61  ;;  %v1750_v21 = vmax.f32 %v1740_v3, 0.0  ;;  %v1577_v16 = vadd.f32 %v1550_v26, %v2998_v25  ;;  %v2344_v20 = vpop.f32.mrb[81].mxu1 }
 0x1b3   : > { %v1553_v17 = vpop.f32.mrb[82].mxu1  ;;  %v1705_v32 = vpop.f32.mrb[80].mxu0 }
 0x1b4   : > { %1800 = vst.msk [vmem:[%s3021_s20 + $0x8] sm:$0xf] %vm1797_vm8, %v2041_v9  ;;  %v2042_v33 = vpack.c.bf16 %v1750_v21, %v1750_v21  ;;  %v1724_v23 = vadd.f32 %v1697_v15, %v1577_v16  ;;  %v1578_v14 = vadd.f32 %v1553_v17, %v3000_v29  ;;  %v2345_v35 = vpop.f32.mrb[83].mxu1  ;;  %v2376_v36 = vpop.f32.mrb[81].mxu0 }
 0x1b5   : > { %v1708_v39 = vpop.f32.mrb[82].mxu0 }
 0x1b6   : > { %1801 = vst.msk [vmem:[%s3021_s20 + $0xc] sm:$0xf] %vm1797_vm8, %v2042_v33  ;;  %v1741_v30 = vadd.f32 %v3013_v45, %v1724_v23  ;;  %v1725_v27 = vadd.f32 %v1700_v24, %v1578_v14  ;;  %v2377_v28 = vpop.f32.mrb[83].mxu0 }
 0x1b8   : > { %v1751_v25 = vmax.f32 %v1741_v30, 0.0  ;;  %v1742_v42 = vadd.f32 %v3013_v45, %v1725_v27 }
 0x1b9   : > { %v1558_v44 = vpop.f32.mrb[84].mxu1 }
 0x1ba   : > { %v2043_v31 = vpack.c.bf16 %v1751_v25, %v1751_v25  ;;  %v1752_v4 = vmax.f32 %v1742_v42, 0.0  ;;  %v1579_v37 = vadd.f32 %v1558_v44, %v3002_v34  ;;  %v2348_v29 = vpop.f32.mrb[85].mxu1 }
 0x1bb   : > { %v1561_v46 = vpop.f32.mrb[86].mxu1  ;;  %v1713_v48 = vpop.f32.mrb[84].mxu0 }
 0x1bc   : > { %1802 = vst.msk [vmem:[%s3021_s20 + $0x10] sm:$0xf] %vm1797_vm8, %v2043_v31  ;;  %v2044_v41 = vpack.c.bf16 %v1752_v4, %v1752_v4  ;;  %v1726_v38 = vadd.f32 %v1705_v32, %v1579_v37  ;;  %v1580_v57 = vadd.f32 %v1561_v46, %v3004_v40  ;;  %v2349_v53 = vpop.f32.mrb[87].mxu1  ;;  %v2380_v54 = vpop.f32.mrb[85].mxu0 }
 0x1bd   : > { %v1716_v19 = vpop.f32.mrb[86].mxu0 }
 0x1be   : > { %1803 = vst.msk [vmem:[%s3021_s20 + $0x14] sm:$0xf] %vm1797_vm8, %v2044_v41  ;;  %v1743_v55 = vadd.f32 %v3013_v45, %v1726_v38  ;;  %v1727_v43 = vadd.f32 %v1708_v39, %v1580_v57  ;;  %v2381_v34 = vpop.f32.mrb[87].mxu0 }
 0x1c0   : > { %v1753_v51 = vmax.f32 %v1743_v55, 0.0  ;;  %v1744_v59 = vadd.f32 %v3013_v45, %v1727_v43 }
 0x1c1   : > { %v1566_v62 = vpop.f32.mrb[88].mxu1 }
 0x1c2   : > { %v2045_v1 = vpack.c.bf16 %v1753_v51, %v1753_v51  ;;  %v1754_v47 = vmax.f32 %v1744_v59, 0.0  ;;  %v1581_v40 = vadd.f32 %v1566_v62, %v3006_v0  ;;  %v2352_v58 = vpop.f32.mrb[89].mxu1 }
 0x1c3   : > { %v1569_v7 = vpop.f32.mrb[90].mxu1 }
 0x1c4   : > { %1804 = vst.msk [vmem:[%s3021_s20 + $0x18] sm:$0xf] %vm1797_vm8, %v2045_v1  ;;  %v2046_v56 = vpack.c.bf16 %v1754_v47, %v1754_v47  ;;  %v1728_v2 = vadd.f32 %v1713_v48, %v1581_v40  ;;  %v1582_v10 = vadd.f32 %v1569_v7, %v3008_v50  ;;  %v2353_v52 = vpop.f32.mrb[91].mxu1 }
 0x1c6   : > { %1805 = vst.msk [vmem:[%s3021_s20 + $0x1c] sm:$0xf] %vm1797_vm8, %v2046_v56  ;;  %v1745_v11 = vadd.f32 %v3013_v45, %v1728_v2  ;;  %v1729_v49 = vadd.f32 %v1716_v19, %v1582_v10 }
 0x1c8   : > { %v1755_v12 = vmax.f32 %v1745_v11, 0.0  ;;  %v1746_v15 = vadd.f32 %v3013_v45, %v1729_v49 }
 0x1ca   : > { %v2047_v60 = vpack.c.bf16 %v1755_v12, %v1755_v12  ;;  %v1756_v0 = vmax.f32 %v1746_v15, 0.0 }
 0x1cc   : > { %1806 = vst.msk [vmem:[%s3021_s20 + $0x20] sm:$0xf] %vm1797_vm8, %v2047_v60  ;;  %v2048_v18 = vpack.c.bf16 %v1756_v0, %v1756_v0 }
 0x1ce   : > { %1807 = vst.msk [vmem:[%s3021_s20 + $0x24] sm:$0xf] %vm1797_vm8, %v2048_v18 }
 0x1cf PF: > { %s14_s14 = sadd.s32 1, %s2544_s14   ;;  %s3080_s12 = smov %s2540_s13 }
 0x1d0   : > { %p11_p4 = scmp.ge.s32.totalorder %s14_s14, 4   ;;  %s3081_s13 = smov %s3083_s16 }
 0x1d2   :  { %13 = sbr.rel (!%p11_p4) target bundleno = 2 (0x2), region = 79 }
 0x1d9   :  { %1835 = vsyncpa [#allocation3], 1 }
 0x1da   :  { %1837 = vsyncpa [#allocation3 + $0x1], 1 }

</bundles_post_ra>
